<compile_context>
chip_gen: v7x
topology: tpu7x:2x2x1
jax: 0.10.0
libtpu: 0.0.40
codegen_flags: <defaults>
</compile_context>

<pallas_src>
import functools

import jax
import jax.numpy as jnp
from jax.experimental import pallas as pl
from jax.experimental.pallas import tpu as pltpu


def _round_up(n, m):
    return ((n + m - 1) // m) * m


# Bucketed static batch-tile sizes (few distinct jit specializations).
_TB_BUCKETS = (256, 512, 1024, 2048)


def _choose_tb(batch):
    """Largest bucket that still yields >= 2 grid steps for large batches."""
    for tb in _TB_BUCKETS[:-1]:
        if batch <= 2 * tb:
            return tb
    return _TB_BUCKETS[-1]


def _mlp_kernel(x_ref, w1_ref, t1_ref, w2_ref, t2_ref, w3_ref, b3_ref,
                o_ref, xpad_ref, *, d0):
    """Fused (Linear+BN+ReLU) x2 -> Linear for one batch tile.

    x_ref   : (TB, d0)   f32  raw input tile (d0 = 85, not lane-aligned)
    w1_ref  : (D0P, H1)  bf16 BN1-scale-folded weight; rows [d0:D0P) are zero
    t1_ref  : (1, H1)    f32  fused BN1 shift
    w2_ref  : (H1, H2)   bf16 BN2-scale-folded weight
    t2_ref  : (1, H2)    f32  fused BN2 shift
    w3_ref  : (H2, D2P)  bf16 decoder weight (output cols zero-padded to 128)
    b3_ref  : (1, D2P)   f32  decoder bias (zero-padded)
    o_ref   : (TB, D2P)  bf16 output tile
    xpad_ref: (TB, D0P)  f32  scratch used to lane-pad x from d0 to 128
    """
    # Lane-pad the input tile inside the kernel (no padded HBM copy of x).
    tb, d0p = xpad_ref.shape
    xpad_ref[:, d0:] = jnp.zeros((tb, d0p - d0), xpad_ref.dtype)
    xpad_ref[:, :d0] = x_ref[...]
    x = xpad_ref[...].astype(jnp.bfloat16)

    # Layer 1: Linear (BN scale folded into w1) -> + shift -> ReLU
    h1 = jnp.dot(x, w1_ref[...], preferred_element_type=jnp.float32)
    h1 = jnp.maximum(h1 + t1_ref[...], 0.0)

    # Layer 2: Linear (BN scale folded into w2) -> + shift -> ReLU
    h2 = jnp.dot(h1.astype(jnp.bfloat16), w2_ref[...],
                 preferred_element_type=jnp.float32)
    h2 = jnp.maximum(h2 + t2_ref[...], 0.0)

    # Decoder: Linear (+ bias), store as bf16.
    y = jnp.dot(h2.astype(jnp.bfloat16), w3_ref[...],
                preferred_element_type=jnp.float32)
    o_ref[...] = (y + b3_ref[...]).astype(o_ref.dtype)


def prepare_params(params, eps=1e-5):
    """One-time preprocessing: fold eval-mode BatchNorm scale into the weight
    columns and its shift into a per-feature vector, zero-pad lane dims to
    multiples of 128, cast weights to bf16."""
    (w1, b1, g1, be1, rm1, rv1,
     w2, b2, g2, be2, rm2, rv2,
     w3, b3) = params

    D0, H1 = w1.shape
    H2 = w2.shape[1]
    D2 = w3.shape[1]
    D0P = _round_up(D0, 128)
    D2P = _round_up(D2, 128)

    # BN(x@W + b) = x @ (W * inv) + ((b - mean) * inv + beta),
    #   inv = gamma / sqrt(var + eps)
    inv1 = g1 / jnp.sqrt(rv1 + eps)
    w1f = w1 * inv1[None, :]
    t1 = ((b1 - rm1) * inv1 + be1).reshape(1, H1).astype(jnp.float32)
    inv2 = g2 / jnp.sqrt(rv2 + eps)
    w2f = (w2 * inv2[None, :]).astype(jnp.bfloat16)
    t2 = ((b2 - rm2) * inv2 + be2).reshape(1, H2).astype(jnp.float32)

    w1p = jnp.zeros((D0P, H1), jnp.bfloat16).at[:D0, :].set(
        w1f.astype(jnp.bfloat16))
    w3p = jnp.zeros((H2, D2P), jnp.bfloat16).at[:, :D2].set(
        w3.astype(jnp.bfloat16))
    b3p = jnp.zeros((1, D2P), jnp.float32).at[0, :D2].set(b3)

    prepared = (w1p, t1, w2f, t2, w3p, b3p)
    return prepared, int(D2)


@functools.partial(jax.jit, static_argnames=("tb",))
def _mlp_pallas(x, w1p, t1, w2f, t2, w3p, b3p, *, tb):
    Bp, D0 = x.shape
    D0P, H1 = w1p.shape
    H2 = w2f.shape[1]
    D2P = w3p.shape[1]

    grid = (pl.cdiv(Bp, tb),)

    flops = 2 * Bp * (D0P * H1 + H1 * H2 + H2 * D2P)
    bytes_accessed = (
        Bp * D0 * 4                                    # x (f32, unpadded)
        + (D0P * H1 + H1 * H2 + H2 * D2P) * 2          # weights (bf16)
        + (H1 + H2 + D2P) * 4                          # shift / bias (f32)
        + Bp * D2P * 2)                                # output (bf16)

    return pl.pallas_call(
        functools.partial(_mlp_kernel, d0=D0),
        out_shape=jax.ShapeDtypeStruct((Bp, D2P), jnp.bfloat16),
        grid_spec=pltpu.PrefetchScalarGridSpec(
            num_scalar_prefetch=0,
            grid=grid,
            in_specs=[
                pl.BlockSpec((tb, D0), lambda i: (i, 0)),    # x tile (85 lanes)
                pl.BlockSpec((D0P, H1), lambda i: (0, 0)),   # w1 (resident)
                pl.BlockSpec((1, H1), lambda i: (0, 0)),     # t1
                pl.BlockSpec((H1, H2), lambda i: (0, 0)),    # w2
                pl.BlockSpec((1, H2), lambda i: (0, 0)),     # t2
                pl.BlockSpec((H2, D2P), lambda i: (0, 0)),   # w3
                pl.BlockSpec((1, D2P), lambda i: (0, 0)),    # b3
            ],
            out_specs=pl.BlockSpec((tb, D2P), lambda i: (i, 0)),
            scratch_shapes=[pltpu.VMEM((tb, D0P), jnp.float32)],
        ),
        compiler_params=pltpu.CompilerParams(
            dimension_semantics=("parallel",)),
        cost_estimate=pl.CostEstimate(
            flops=flops, transcendentals=0, bytes_accessed=bytes_accessed),
    )(x, w1p, t1, w2f, t2, w3p, b3p)


def mlp_forward(x, prepared, *, out_dim):
    """x: (B, 85) float32 -> (B, out_dim=83) bfloat16."""
    w1p, t1, w2f, t2, w3p, b3p = prepared
    B = x.shape[0]
    tb = _choose_tb(B)
    if B < tb:
        # Tiny batches only: pad rows to one full tile (negligible copy) so a
        # batch block never exceeds the array extent. Larger batches are fed
        # unpadded; the trailing partial block is masked by Pallas.
        x = jnp.pad(x, ((0, tb - B), (0, 0)))
    out = _mlp_pallas(x, w1p, t1, w2f, t2, w3p, b3p, tb=tb)
    # Known extra (small, bf16) pass: strip row / lane padding for the consumer.
    return out[:B, :out_dim]


def init_params(key):
    """Deterministic parameter init matching the PyTorch module's shapes."""
    ks = jax.random.split(key, 6)

    def linear(kw, kb, fan_in, fan_out):
        bound = 1.0 / jnp.sqrt(fan_in)
        w = jax.random.uniform(kw, (fan_in, fan_out), jnp.float32, -bound, bound)
        b = jax.random.uniform(kb, (fan_out,), jnp.float32, -bound, bound)
        return w, b

    w1, b1 = linear(ks[0], ks[1], 85, 256)
    w2, b2 = linear(ks[2], ks[3], 256, 128)
    w3, b3 = linear(ks[4], ks[5], 128, 83)

    # BatchNorm1d params (eval mode): gamma=1, beta=0, running_mean=0, running_var=1
    g1, be1 = jnp.ones((256,), jnp.float32), jnp.zeros((256,), jnp.float32)
    rm1, rv1 = jnp.zeros((256,), jnp.float32), jnp.ones((256,), jnp.float32)
    g2, be2 = jnp.ones((128,), jnp.float32), jnp.zeros((128,), jnp.float32)
    rm2, rv2 = jnp.zeros((128,), jnp.float32), jnp.ones((128,), jnp.float32)

    return (w1, b1, g1, be1, rm1, rv1,
            w2, b2, g2, be2, rm2, rv2,
            w3, b3)


def reference_forward(x, params):
    """Pure-JAX f32 reference for correctness checking."""
    (w1, b1, g1, be1, rm1, rv1,
     w2, b2, g2, be2, rm2, rv2,
     w3, b3) = params
    eps = 1e-5
    h = x @ w1 + b1
    h = g1 * (h - rm1) / jnp.sqrt(rv1 + eps) + be1
    h = jnp.maximum(h, 0.0)
    h = h @ w2 + b2
    h = g2 * (h - rm2) / jnp.sqrt(rv2 + eps) + be2
    h = jnp.maximum(h, 0.0)
    return h @ w3 + b3


if __name__ == "__main__":
    key = jax.random.PRNGKey(0)
    k_param, k_x = jax.random.split(key)

    params = init_params(k_param)
    prepared, out_dim = prepare_params(params)

    B = 8
    x = jax.random.normal(k_x, (B, 85), jnp.float32)

    y = mlp_forward(x, prepared, out_dim=out_dim)
    y = jax.block_until_ready(y)

    y_ref = reference_forward(x, params)
    assert y.shape == (B, 83), y.shape
    # bf16 MXU operands / bf16 output with f32 accumulation -> loosened
    # tolerance vs the f32 reference.
    y32 = y.astype(jnp.float32)
    assert jnp.allclose(y32, y_ref, atol=3e-2, rtol=3e-2), \
        float(jnp.max(jnp.abs(y32 - y_ref)))

    print("KERNEL_OK")
</pallas_src>

<mosaic_0001>
module attributes {stable_mosaic.version = 11 : i64} {
  func.func @_mlp_kernel(%arg0: i32, %arg1: memref<256x85xf32, #tpu.memory_space<vmem>>, %arg2: memref<128x256xbf16, #tpu.memory_space<vmem>>, %arg3: memref<1x256xf32, #tpu.memory_space<vmem>>, %arg4: memref<256x128xbf16, #tpu.memory_space<vmem>>, %arg5: memref<1x128xf32, #tpu.memory_space<vmem>>, %arg6: memref<128x128xbf16, #tpu.memory_space<vmem>>, %arg7: memref<1x128xf32, #tpu.memory_space<vmem>>, %arg8: memref<256x128xbf16, #tpu.memory_space<vmem>>, %arg9: memref<256x128xf32, #tpu.memory_space<vmem>>) attributes {dimension_semantics = [#tpu.dimension_semantics<parallel>], iteration_bounds = array<i64: 1>, scalar_prefetch = 0 : i64, scratch_operands = 1 : i64, tpu.core_type = #tpu.core_type<tc>, window_params = [{transform_indices = @transform_0, window_bounds = array<i64: 256, 85>}, {pipeline_mode = #tpu.pipeline_mode<synchronous>, transform_indices = @transform_1, window_bounds = array<i64: 128, 256>}, {pipeline_mode = #tpu.pipeline_mode<synchronous>, transform_indices = @transform_2, window_bounds = array<i64: 1, 256>}, {pipeline_mode = #tpu.pipeline_mode<synchronous>, transform_indices = @transform_3, window_bounds = array<i64: 256, 128>}, {pipeline_mode = #tpu.pipeline_mode<synchronous>, transform_indices = @transform_4, window_bounds = array<i64: 1, 128>}, {pipeline_mode = #tpu.pipeline_mode<synchronous>, transform_indices = @transform_5, window_bounds = array<i64: 128, 128>}, {pipeline_mode = #tpu.pipeline_mode<synchronous>, transform_indices = @transform_6, window_bounds = array<i64: 1, 128>}, {transform_indices = @transform_7, window_bounds = array<i64: 256, 128>}]} {
    %cst = arith.constant 0.000000e+00 : f32
    %0 = vector.broadcast %cst : f32 to vector<256x43xf32>
    %c0 = arith.constant 0 : index
    %c85 = arith.constant 85 : index
    %1 = vector.load %arg9[%c0, %c85] : memref<256x128xf32, #tpu.memory_space<vmem>>, vector<256x43xf32>
    tpu.vector_store %arg9[%c0, %c85], %0 {strides = array<i32>} : memref<256x128xf32, #tpu.memory_space<vmem>>, vector<256x43xf32>,
    %c0_0 = arith.constant 0 : index
    %c0_1 = arith.constant 0 : index
    %2 = vector.load %arg1[%c0_0, %c0_1] : memref<256x85xf32, #tpu.memory_space<vmem>>, vector<256x85xf32>
    %c0_2 = arith.constant 0 : index
    %c0_3 = arith.constant 0 : index
    %3 = vector.load %arg9[%c0_2, %c0_3] : memref<256x128xf32, #tpu.memory_space<vmem>>, vector<256x85xf32>
    tpu.vector_store %arg9[%c0_2, %c0_3], %2 {strides = array<i32>} : memref<256x128xf32, #tpu.memory_space<vmem>>, vector<256x85xf32>,
    %c0_4 = arith.constant 0 : index
    %c0_5 = arith.constant 0 : index
    %4 = vector.load %arg9[%c0_4, %c0_5] : memref<256x128xf32, #tpu.memory_space<vmem>>, vector<256x128xf32>
    %5 = arith.truncf %4 : vector<256x128xf32> to vector<256x128xbf16>
    %c0_6 = arith.constant 0 : index
    %c0_7 = arith.constant 0 : index
    %6 = vector.load %arg2[%c0_6, %c0_7] : memref<128x256xbf16, #tpu.memory_space<vmem>>, vector<128x256xbf16>
    %cst_8 = arith.constant dense<0.000000e+00> : vector<256x256xf32>
    %7 = tpu.matmul %5, %6, %cst_8 {dimension_numbers = #tpu.dot_dimension_numbers<[1], [0], [0], [1], [0, 0, 1, 1], [], []>} : vector<256x128xbf16>, vector<128x256xbf16>, vector<256x256xf32> -> vector<256x256xf32>
    %c0_9 = arith.constant 0 : index
    %c0_10 = arith.constant 0 : index
    %8 = vector.load %arg3[%c0_9, %c0_10] : memref<1x256xf32, #tpu.memory_space<vmem>>, vector<1x256xf32>
    %9 = vector.broadcast %8 : vector<1x256xf32> to vector<256x256xf32>
    %10 = arith.addf %7, %9 : vector<256x256xf32>
    %cst_11 = arith.constant 0.000000e+00 : f32
    %11 = vector.broadcast %cst_11 : f32 to vector<256x256xf32>
    %12 = arith.maximumf %10, %11 : vector<256x256xf32>
    %13 = arith.truncf %12 : vector<256x256xf32> to vector<256x256xbf16>
    %c0_12 = arith.constant 0 : index
    %c0_13 = arith.constant 0 : index
    %14 = vector.load %arg4[%c0_12, %c0_13] : memref<256x128xbf16, #tpu.memory_space<vmem>>, vector<256x128xbf16>
    %cst_14 = arith.constant dense<0.000000e+00> : vector<256x128xf32>
    %15 = tpu.matmul %13, %14, %cst_14 {dimension_numbers = #tpu.dot_dimension_numbers<[1], [0], [0], [1], [0, 0, 1, 1], [], []>} : vector<256x256xbf16>, vector<256x128xbf16>, vector<256x128xf32> -> vector<256x128xf32>
    %c0_15 = arith.constant 0 : index
    %c0_16 = arith.constant 0 : index
    %16 = vector.load %arg5[%c0_15, %c0_16] : memref<1x128xf32, #tpu.memory_space<vmem>>, vector<1x128xf32>
    %17 = vector.broadcast %16 : vector<1x128xf32> to vector<256x128xf32>
    %18 = arith.addf %15, %17 : vector<256x128xf32>
    %cst_17 = arith.constant 0.000000e+00 : f32
    %19 = vector.broadcast %cst_17 : f32 to vector<256x128xf32>
    %20 = arith.maximumf %18, %19 : vector<256x128xf32>
    %21 = arith.truncf %20 : vector<256x128xf32> to vector<256x128xbf16>
    %c0_18 = arith.constant 0 : index
    %c0_19 = arith.constant 0 : index
    %22 = vector.load %arg6[%c0_18, %c0_19] : memref<128x128xbf16, #tpu.memory_space<vmem>>, vector<128x128xbf16>
    %cst_20 = arith.constant dense<0.000000e+00> : vector<256x128xf32>
    %23 = tpu.matmul %21, %22, %cst_20 {dimension_numbers = #tpu.dot_dimension_numbers<[1], [0], [0], [1], [0, 0, 1, 1], [], []>} : vector<256x128xbf16>, vector<128x128xbf16>, vector<256x128xf32> -> vector<256x128xf32>
    %c0_21 = arith.constant 0 : index
    %c0_22 = arith.constant 0 : index
    %24 = vector.load %arg7[%c0_21, %c0_22] : memref<1x128xf32, #tpu.memory_space<vmem>>, vector<1x128xf32>
    %25 = vector.broadcast %24 : vector<1x128xf32> to vector<256x128xf32>
    %26 = arith.addf %23, %25 : vector<256x128xf32>
    %27 = arith.truncf %26 : vector<256x128xf32> to vector<256x128xbf16>
    %c0_23 = arith.constant 0 : index
    %c0_24 = arith.constant 0 : index
    %28 = vector.load %arg8[%c0_23, %c0_24] : memref<256x128xbf16, #tpu.memory_space<vmem>>, vector<256x128xbf16>
    tpu.vector_store %arg8[%c0_23, %c0_24], %27 {strides = array<i32>} : memref<256x128xbf16, #tpu.memory_space<vmem>>, vector<256x128xbf16>,
    return
  }
  func.func @transform_0(%arg0: i32) -> (i32, i32) {
    %c0_i32 = arith.constant 0 : i32
    %c0_i32_0 = arith.constant 0 : i32
    return %arg0, %c0_i32 : i32, i32
  }
  func.func @transform_1(%arg0: i32) -> (i32, i32) {
    %c0_i32 = arith.constant 0 : i32
    %c0_i32_0 = arith.constant 0 : i32
    %c0_i32_1 = arith.constant 0 : i32
    return %c0_i32, %c0_i32_0 : i32, i32
  }
  func.func @transform_2(%arg0: i32) -> (i32, i32) {
    %c0_i32 = arith.constant 0 : i32
    %c0_i32_0 = arith.constant 0 : i32
    %c0_i32_1 = arith.constant 0 : i32
    return %c0_i32, %c0_i32_0 : i32, i32
  }
  func.func @transform_3(%arg0: i32) -> (i32, i32) {
    %c0_i32 = arith.constant 0 : i32
    %c0_i32_0 = arith.constant 0 : i32
    %c0_i32_1 = arith.constant 0 : i32
    return %c0_i32, %c0_i32_0 : i32, i32
  }
  func.func @transform_4(%arg0: i32) -> (i32, i32) {
    %c0_i32 = arith.constant 0 : i32
    %c0_i32_0 = arith.constant 0 : i32
    %c0_i32_1 = arith.constant 0 : i32
    return %c0_i32, %c0_i32_0 : i32, i32
  }
  func.func @transform_5(%arg0: i32) -> (i32, i32) {
    %c0_i32 = arith.constant 0 : i32
    %c0_i32_0 = arith.constant 0 : i32
    %c0_i32_1 = arith.constant 0 : i32
    return %c0_i32, %c0_i32_0 : i32, i32
  }
  func.func @transform_6(%arg0: i32) -> (i32, i32) {
    %c0_i32 = arith.constant 0 : i32
    %c0_i32_0 = arith.constant 0 : i32
    %c0_i32_1 = arith.constant 0 : i32
    return %c0_i32, %c0_i32_0 : i32, i32
  }
  func.func @transform_7(%arg0: i32) -> (i32, i32) {
    %c0_i32 = arith.constant 0 : i32
    %c0_i32_0 = arith.constant 0 : i32
    return %arg0, %c0_i32 : i32, i32
  }
}

</mosaic_0001>

<bundles_post_ra>
// kernel: _mlp_pallas.1
= control target key start
LH: loop header
LB: loop body
LE: loop exit
PB: predicated region body
PF: predicated region fallthrough
CT: control target
= control target key end

     0   :  { %vm28_vm0 = vcmask 1048232   ;;  %v1801_v2 = vmov 0   ;;  %v1802_v4 = vmov 0.0   ;;  %vm93_vm1 = vcmask 695296   ;;  %s2323_s0 = inlined_call_operand.vmem [shape: f32[256,85], index: 0, kind: input, shape index: {}]   ;;  %s2324_s1 = inlined_call_operand.vmem [shape: bf16[128,256], index: 1, kind: input, shape index: {}]   ;;  %s2325_s2 = inlined_call_operand.vmem [shape: f32[1,256], index: 2, kind: input, shape index: {}]   ;;  %s2326_s3 = inlined_call_operand.vmem [shape: bf16[256,128], index: 3, kind: input, shape index: {}]   ;;  %s2327_s4 = inlined_call_operand.vmem [shape: f32[1,128], index: 4, kind: input, shape index: {}]   ;;  %s2328_s5 = inlined_call_operand.vmem [shape: bf16[128,128], index: 5, kind: input, shape index: {}]   ;;  %s2329_s6 = inlined_call_operand.vmem [shape: f32[1,128], index: 6, kind: input, shape index: {}]   ;;  %s2330_s7 = inlined_call_operand.hbm [shape: bf16[256,128], index: 7, kind: output, shape index: {}]  }
   0x1   :  { %v1729_v0 = vld [vmem:[%s2324_s1 + $0x4] ss:$8 sps:$4 sm:$0xff]   ;;  %v1731_v1 = vld [vmem:[%s2324_s1] ss:$8 sps:$4 sm:$0xff]   ;;  %314 = vmatprep.mubr.bf16.mxu0 %v1801_v2  ;;  %434 = vmatprep.mubr.bf16.mxu1 %v1801_v2  ;;  %v1732_v3 = vld [vmem:[%s2324_s1 + $0x14] ss:$8 sps:$4 sm:$0xff]  }
   0x2   :  { %282 = vmatprep.subr.bf16.mxu0 %v1729_v0  ;;  %29 = vst.msk [vmem:[#allocation2] sm:$0xff] %vm28_vm0, %v1802_v4  ;;  %30 = vst.msk [vmem:[#allocation2 + $0x8] sm:$0xff] %vm28_vm0, %v1802_v4  ;;  %1708 = vmatprep.subr.bf16.mxu1 %v1729_v0  ;;  %v1734_v5 = vld [vmem:[%s2324_s1 + $0x10] ss:$8 sps:$4 sm:$0xff]   ;;  %v1735_v6 = vld [vmem:[%s2324_s1 + $0x24] ss:$8 sps:$4 sm:$0xff]  }
   0x3   :  { %31 = vst.msk [vmem:[#allocation2 + $0x10] sm:$0xff] %vm28_vm0, %v1802_v4  ;;  %32 = vst.msk [vmem:[#allocation2 + $0x18] sm:$0xff] %vm28_vm0, %v1802_v4  ;;  %283 = vmatpush1.bf16.msra.mxu0 %v1731_v1  ;;  %1716 = vmatpush1.bf16.msra.mxu1 %v1731_v1  ;;  %v1737_v7 = vld [vmem:[%s2324_s1 + $0x20] ss:$8 sps:$4 sm:$0xff]   ;;  %v1738_v8 = vld [vmem:[%s2324_s1 + $0x34] ss:$8 sps:$4 sm:$0xff]  }
   0x4   :  { %33 = vst.msk [vmem:[#allocation2 + $0x20] sm:$0xff] %vm28_vm0, %v1802_v4  ;;  %34 = vst.msk [vmem:[#allocation2 + $0x28] sm:$0xff] %vm28_vm0, %v1802_v4  ;;  %284 = vmatprep.subr.bf16.mxu0 %v1732_v3  ;;  %1709 = vmatprep.subr.bf16.mxu1 %v1732_v3  ;;  %v1740_v9 = vld [vmem:[%s2324_s1 + $0x30] ss:$8 sps:$4 sm:$0xff]   ;;  %v1741_v10 = vld [vmem:[%s2324_s1 + $0x44] ss:$8 sps:$4 sm:$0xff]  }
   0x5   :  { %35 = vst.msk [vmem:[#allocation2 + $0x30] sm:$0xff] %vm28_vm0, %v1802_v4  ;;  %36 = vst.msk [vmem:[#allocation2 + $0x38] sm:$0xff] %vm28_vm0, %v1802_v4  ;;  %v61_v11 = vld [vmem:[%s2323_s0] sm:$0xff]  ;;  %v62_v12 = vld [vmem:[%s2323_s0 + $0x8] sm:$0xff] }
   0x6   :  { %37 = vst.msk [vmem:[#allocation2 + $0x40] sm:$0xff] %vm28_vm0, %v1802_v4  ;;  %38 = vst.msk [vmem:[#allocation2 + $0x48] sm:$0xff] %vm28_vm0, %v1802_v4  ;;  %v63_v13 = vld [vmem:[%s2323_s0 + $0x10] sm:$0xff]  ;;  %v64_v14 = vld [vmem:[%s2323_s0 + $0x18] sm:$0xff] }
   0x7   :  { %39 = vst.msk [vmem:[#allocation2 + $0x50] sm:$0xff] %vm28_vm0, %v1802_v4  ;;  %40 = vst.msk [vmem:[#allocation2 + $0x58] sm:$0xff] %vm28_vm0, %v1802_v4  ;;  %285 = vmatpush1.bf16.msra.mxu0 %v1734_v5  ;;  %1717 = vmatpush1.bf16.msra.mxu1 %v1734_v5  ;;  %v65_v15 = vld [vmem:[%s2323_s0 + $0x20] sm:$0xff]  ;;  %v66_v16 = vld [vmem:[%s2323_s0 + $0x28] sm:$0xff] }
   0x8   :  { %41 = vst.msk [vmem:[#allocation2 + $0x60] sm:$0xff] %vm28_vm0, %v1802_v4  ;;  %42 = vst.msk [vmem:[#allocation2 + $0x68] sm:$0xff] %vm28_vm0, %v1802_v4  ;;  %286 = vmatprep.subr.bf16.mxu0 %v1735_v6  ;;  %1710 = vmatprep.subr.bf16.mxu1 %v1735_v6  ;;  %v67_v17 = vld [vmem:[%s2323_s0 + $0x30] sm:$0xff]  ;;  %v1743_v18 = vld [vmem:[%s2324_s1 + $0x40] ss:$8 sps:$4 sm:$0xff]  }
   0x9   :  { %43 = vst.msk [vmem:[#allocation2 + $0x70] sm:$0xff] %vm28_vm0, %v1802_v4  ;;  %44 = vst.msk [vmem:[#allocation2 + $0x78] sm:$0xff] %vm28_vm0, %v1802_v4  ;;  %v68_v19 = vld [vmem:[%s2323_s0 + $0x38] sm:$0xff]  ;;  %v69_v20 = vld [vmem:[%s2323_s0 + $0x40] sm:$0xff] }
   0xa   :  { %45 = vst.msk [vmem:[#allocation2 + $0x80] sm:$0xff] %vm28_vm0, %v1802_v4  ;;  %46 = vst.msk [vmem:[#allocation2 + $0x88] sm:$0xff] %vm28_vm0, %v1802_v4  ;;  %v70_v21 = vld [vmem:[%s2323_s0 + $0x48] sm:$0xff]  ;;  %v1744_v22 = vld [vmem:[%s2324_s1 + $0x54] ss:$8 sps:$4 sm:$0xff]  }
   0xb   :  { %47 = vst.msk [vmem:[#allocation2 + $0x90] sm:$0xff] %vm28_vm0, %v1802_v4  ;;  %48 = vst.msk [vmem:[#allocation2 + $0x98] sm:$0xff] %vm28_vm0, %v1802_v4  ;;  %287 = vmatpush1.bf16.msra.mxu0 %v1737_v7  ;;  %1718 = vmatpush1.bf16.msra.mxu1 %v1737_v7  ;;  %v71_v23 = vld [vmem:[%s2323_s0 + $0x50] sm:$0xff]  ;;  %v72_v24 = vld [vmem:[%s2323_s0 + $0x58] sm:$0xff] }
   0xc   :  { %49 = vst.msk [vmem:[#allocation2 + $0xa0] sm:$0xff] %vm28_vm0, %v1802_v4  ;;  %50 = vst.msk [vmem:[#allocation2 + $0xa8] sm:$0xff] %vm28_vm0, %v1802_v4  ;;  %288 = vmatprep.subr.bf16.mxu0 %v1738_v8  ;;  %1711 = vmatprep.subr.bf16.mxu1 %v1738_v8  ;;  %v73_v25 = vld [vmem:[%s2323_s0 + $0x60] sm:$0xff]  ;;  %v74_v26 = vld [vmem:[%s2323_s0 + $0x68] sm:$0xff] }
   0xd   :  { %51 = vst.msk [vmem:[#allocation2 + $0xb0] sm:$0xff] %vm28_vm0, %v1802_v4  ;;  %52 = vst.msk [vmem:[#allocation2 + $0xb8] sm:$0xff] %vm28_vm0, %v1802_v4  ;;  %v75_v27 = vld [vmem:[%s2323_s0 + $0x70] sm:$0xff]  ;;  %v76_v28 = vld [vmem:[%s2323_s0 + $0x78] sm:$0xff] }
   0xe   :  { %53 = vst.msk [vmem:[#allocation2 + $0xc0] sm:$0xff] %vm28_vm0, %v1802_v4  ;;  %54 = vst.msk [vmem:[#allocation2 + $0xc8] sm:$0xff] %vm28_vm0, %v1802_v4  ;;  %v77_v29 = vld [vmem:[%s2323_s0 + $0x80] sm:$0xff]  ;;  %v78_v30 = vld [vmem:[%s2323_s0 + $0x88] sm:$0xff] }
   0xf   :  { %55 = vst.msk [vmem:[#allocation2 + $0xd0] sm:$0xff] %vm28_vm0, %v1802_v4  ;;  %56 = vst.msk [vmem:[#allocation2 + $0xd8] sm:$0xff] %vm28_vm0, %v1802_v4  ;;  %289 = vmatpush1.bf16.msra.mxu0 %v1740_v9  ;;  %1719 = vmatpush1.bf16.msra.mxu1 %v1740_v9  ;;  %v79_v31 = vld [vmem:[%s2323_s0 + $0x90] sm:$0xff]  ;;  %v80_v32 = vld [vmem:[%s2323_s0 + $0x98] sm:$0xff] }
  0x10   :  { %57 = vst.msk [vmem:[#allocation2 + $0xe0] sm:$0xff] %vm28_vm0, %v1802_v4  ;;  %58 = vst.msk [vmem:[#allocation2 + $0xe8] sm:$0xff] %vm28_vm0, %v1802_v4  ;;  %290 = vmatprep.subr.bf16.mxu0 %v1741_v10  ;;  %1712 = vmatprep.subr.bf16.mxu1 %v1741_v10  ;;  %v81_v33 = vld [vmem:[%s2323_s0 + $0xa0] sm:$0xff]  ;;  %v82_v34 = vld [vmem:[%s2323_s0 + $0xa8] sm:$0xff] }
  0x11   :  { %59 = vst.msk [vmem:[#allocation2 + $0xf0] sm:$0xff] %vm28_vm0, %v1802_v4  ;;  %60 = vst.msk [vmem:[#allocation2 + $0xf8] sm:$0xff] %vm28_vm0, %v1802_v4  ;;  %v83_v35 = vld [vmem:[%s2323_s0 + $0xb0] sm:$0xff]  ;;  %v84_v36 = vld [vmem:[%s2323_s0 + $0xb8] sm:$0xff] }
  0x12   :  { %94 = vst.msk [vmem:[#allocation2] sm:$0xff] %vm93_vm1, %v61_v11  ;;  %95 = vst.msk [vmem:[#allocation2 + $0x8] sm:$0xff] %vm93_vm1, %v62_v12  ;;  %v1746_v37 = vld [vmem:[%s2324_s1 + $0x50] ss:$8 sps:$4 sm:$0xff]   ;;  %v1747_v38 = vld [vmem:[%s2324_s1 + $0x64] ss:$8 sps:$4 sm:$0xff]  }
  0x13   :  { %96 = vst.msk [vmem:[#allocation2 + $0x10] sm:$0xff] %vm93_vm1, %v63_v13  ;;  %97 = vst.msk [vmem:[#allocation2 + $0x18] sm:$0xff] %vm93_vm1, %v64_v14  ;;  %291 = vmatpush1.bf16.msra.mxu0 %v1743_v18  ;;  %1720 = vmatpush1.bf16.msra.mxu1 %v1743_v18  ;;  %v1749_v39 = vld [vmem:[%s2324_s1 + $0x60] ss:$8 sps:$4 sm:$0xff]   ;;  %v1750_v40 = vld [vmem:[%s2324_s1 + $0x74] ss:$8 sps:$4 sm:$0xff]  }
  0x14   :  { %98 = vst.msk [vmem:[#allocation2 + $0x20] sm:$0xff] %vm93_vm1, %v65_v15  ;;  %99 = vst.msk [vmem:[#allocation2 + $0x28] sm:$0xff] %vm93_vm1, %v66_v16  ;;  %292 = vmatprep.subr.bf16.mxu0 %v1744_v22  ;;  %1713 = vmatprep.subr.bf16.mxu1 %v1744_v22  ;;  %v1752_v41 = vld [vmem:[%s2324_s1 + $0x70] ss:$8 sps:$4 sm:$0xff]   ;;  %v85_v44 = vld [vmem:[%s2323_s0 + $0xc0] sm:$0xff] }
  0x15   :  { %100 = vst.msk [vmem:[#allocation2 + $0x30] sm:$0xff] %vm93_vm1, %v67_v17  ;;  %101 = vst.msk [vmem:[#allocation2 + $0x38] sm:$0xff] %vm93_vm1, %v68_v19  ;;  %v86_v45 = vld [vmem:[%s2323_s0 + $0xc8] sm:$0xff]  ;;  %v87_v46 = vld [vmem:[%s2323_s0 + $0xd0] sm:$0xff] }
  0x16   :  { %102 = vst.msk [vmem:[#allocation2 + $0x40] sm:$0xff] %vm93_vm1, %v69_v20  ;;  %103 = vst.msk [vmem:[#allocation2 + $0x48] sm:$0xff] %vm93_vm1, %v70_v21  ;;  %v88_v47 = vld [vmem:[%s2323_s0 + $0xd8] sm:$0xff]  ;;  %v89_v48 = vld [vmem:[%s2323_s0 + $0xe0] sm:$0xff] }
  0x17   :  { %104 = vst.msk [vmem:[#allocation2 + $0x50] sm:$0xff] %vm93_vm1, %v71_v23  ;;  %105 = vst.msk [vmem:[#allocation2 + $0x58] sm:$0xff] %vm93_vm1, %v72_v24  ;;  %293 = vmatpush1.bf16.msra.mxu0 %v1746_v37  ;;  %1721 = vmatpush1.bf16.msra.mxu1 %v1746_v37  ;;  %v90_v49 = vld [vmem:[%s2323_s0 + $0xe8] sm:$0xff]  ;;  %v91_v50 = vld [vmem:[%s2323_s0 + $0xf0] sm:$0xff] }
  0x18   :  { %106 = vst.msk [vmem:[#allocation2 + $0x60] sm:$0xff] %vm93_vm1, %v73_v25  ;;  %107 = vst.msk [vmem:[#allocation2 + $0x68] sm:$0xff] %vm93_vm1, %v74_v26  ;;  %294 = vmatprep.subr.bf16.mxu0 %v1747_v38  ;;  %1714 = vmatprep.subr.bf16.mxu1 %v1747_v38  ;;  %v92_v51 = vld [vmem:[%s2323_s0 + $0xf8] sm:$0xff]  ;;  %v1753_v53 = vld [vmem:[%s2326_s3 + $0x40] sm:$0xff]  }
  0x19   :  { %108 = vst.msk [vmem:[#allocation2 + $0x70] sm:$0xff] %vm93_vm1, %v75_v27  ;;  %109 = vst.msk [vmem:[#allocation2 + $0x78] sm:$0xff] %vm93_vm1, %v76_v28  ;;  %v126_v42 = vld [vmem:[#allocation2] sm:$0xff]  ;;  %v127_v43 = vld [vmem:[#allocation2 + $0x8] sm:$0xff] }
  0x1a   :  { %110 = vst.msk [vmem:[#allocation2 + $0x80] sm:$0xff] %vm93_vm1, %v77_v29  ;;  %111 = vst.msk [vmem:[#allocation2 + $0x88] sm:$0xff] %vm93_vm1, %v78_v30  ;;  %v158_v52 = vpack.c.bf16 %v127_v43, %v126_v42  ;;  %v128_v54 = vld [vmem:[#allocation2 + $0x10] sm:$0xff]  ;;  %v129_v56 = vld [vmem:[#allocation2 + $0x18] sm:$0xff] }
  0x1b   :  { %112 = vst.msk [vmem:[#allocation2 + $0x90] sm:$0xff] %vm93_vm1, %v79_v31  ;;  %113 = vst.msk [vmem:[#allocation2 + $0x98] sm:$0xff] %vm93_vm1, %v80_v32  ;;  %295 = vmatpush1.bf16.msra.mxu0 %v1749_v39  ;;  %1722 = vmatpush1.bf16.msra.mxu1 %v1749_v39  ;;  %v1754_v58 = vld [vmem:[%s2326_s3] sm:$0xff]   ;;  %v1755_v60 = vld [vmem:[%s2326_s3 + $0x48] sm:$0xff]   ;;  %v159_v62 = vpack.c.bf16 %v129_v56, %v128_v54 }
  0x1c   :  { %114 = vst.msk [vmem:[#allocation2 + $0xa0] sm:$0xff] %vm93_vm1, %v81_v33  ;;  %115 = vst.msk [vmem:[#allocation2 + $0xa8] sm:$0xff] %vm93_vm1, %v82_v34  ;;  %296 = vmatprep.subr.bf16.mxu0 %v1750_v40  ;;  %1715 = vmatprep.subr.bf16.mxu1 %v1750_v40  ;;  %v1756_v61 = vld [vmem:[%s2326_s3 + $0x8] sm:$0xff]   ;;  %v1757_v1 = vld [vmem:[%s2326_s3 + $0x50] sm:$0xff]  }
  0x1d   :  { %116 = vst.msk [vmem:[#allocation2 + $0xb0] sm:$0xff] %vm93_vm1, %v83_v35  ;;  %117 = vst.msk [vmem:[#allocation2 + $0xb8] sm:$0xff] %vm93_vm1, %v84_v36  ;;  %v130_v3 = vld [vmem:[#allocation2 + $0x20] sm:$0xff]  ;;  %v131_v4 = vld [vmem:[#allocation2 + $0x28] sm:$0xff] }
  0x1e   :  { %118 = vst.msk [vmem:[#allocation2 + $0xc0] sm:$0xff] %vm93_vm1, %v85_v44  ;;  %119 = vst.msk [vmem:[#allocation2 + $0xc8] sm:$0xff] %vm93_vm1, %v86_v45  ;;  %v1758_v6 = vld [vmem:[%s2326_s3 + $0x10] sm:$0xff]   ;;  %v1759_v7 = vld [vmem:[%s2326_s3 + $0x58] sm:$0xff]   ;;  %v160_v11 = vpack.c.bf16 %v131_v4, %v130_v3 }
  0x1f   :  { %120 = vst.msk [vmem:[#allocation2 + $0xd0] sm:$0xff] %vm93_vm1, %v87_v46  ;;  %121 = vst.msk [vmem:[#allocation2 + $0xd8] sm:$0xff] %vm93_vm1, %v88_v47  ;;  %297 = vmatpush1.bf16.msra.mxu0 %v1752_v41  ;;  %1723 = vmatpush1.bf16.msra.mxu1 %v1752_v41  ;;  %v1760_v10 = vld [vmem:[%s2326_s3 + $0x18] sm:$0xff]   ;;  %v1761_v12 = vld [vmem:[%s2326_s3 + $0x60] sm:$0xff]  }
  0x20   :  { %122 = vst.msk [vmem:[#allocation2 + $0xe0] sm:$0xff] %vm93_vm1, %v89_v48  ;;  %123 = vst.msk [vmem:[#allocation2 + $0xe8] sm:$0xff] %vm93_vm1, %v90_v49  ;;  %1524 = vmatprep.subr.bf16.mxu1 %v1753_v53  ;;  %v132_v13 = vld [vmem:[#allocation2 + $0x30] sm:$0xff]  ;;  %v133_v14 = vld [vmem:[#allocation2 + $0x38] sm:$0xff] }
  0x21   :  { %124 = vst.msk [vmem:[#allocation2 + $0xf0] sm:$0xff] %vm93_vm1, %v91_v50  ;;  %125 = vst.msk [vmem:[#allocation2 + $0xf8] sm:$0xff] %vm93_vm1, %v92_v51  ;;  %v1762_v15 = vld [vmem:[%s2326_s3 + $0x20] sm:$0xff]   ;;  %v1763_v17 = vld [vmem:[%s2326_s3 + $0x68] sm:$0xff]  }
  0x22   :  { %315 = vmatmul.mubr.bf16.vlgmr.msra.gmra.mrb[0].mxu0 %v158_v52 }
  0x23   :  { %324 = vmatprep.mubr.bf16.mxu0 %v1801_v2 }
  0x25   :  { %v150_v55 = vld [vmem:[#allocation2 + $0xc0] sm:$0xff]  ;;  %v151_v57 = vld [vmem:[#allocation2 + $0xc8] sm:$0xff] }
  0x26   :  { %v170_v59 = vpack.c.bf16 %v151_v57, %v150_v55  ;;  %v152_v63 = vld [vmem:[#allocation2 + $0xd0] sm:$0xff]  ;;  %v153_v0 = vld [vmem:[#allocation2 + $0xd8] sm:$0xff] }
  0x27   :  { %v171_v5 = vpack.c.bf16 %v153_v0, %v152_v63  ;;  %v154_v8 = vld [vmem:[#allocation2 + $0xe0] sm:$0xff]  ;;  %v155_v9 = vld [vmem:[#allocation2 + $0xe8] sm:$0xff] }
  0x28   :  { %435 = vmatmul.mubr.bf16.vlgmr.msra.gmra.mrb[0].mxu1 %v170_v59  ;;  %v172_v16 = vpack.c.bf16 %v155_v9, %v154_v8 }
  0x29   :  { %444 = vmatprep.mubr.bf16.mxu1 %v1801_v2  ;;  %1525 = vmatpush3.bf16.msra.mxu1 %v1754_v58 }
  0x2a   :  { %1526 = vmatprep.subr.bf16.mxu1 %v1755_v60  ;;  %325 = vmatmul.mubr.bf16.gmra.mrb[4].mxu0 %v159_v62 }
  0x2b   :  { %334 = vmatprep.mubr.bf16.mxu0 %v1801_v2 }
  0x2d   :  { %1527 = vmatpush3.bf16.msra.mxu1 %v1756_v61 }
  0x2e   :  { %1528 = vmatprep.subr.bf16.mxu1 %v1757_v1 }
  0x30   :  { %445 = vmatmul.mubr.bf16.gmra.mrb[4].mxu1 %v171_v5 }
  0x31   :  { %454 = vmatprep.mubr.bf16.mxu1 %v1801_v2  ;;  %1529 = vmatpush3.bf16.msra.mxu1 %v1758_v6 }
  0x32   :  { %1530 = vmatprep.subr.bf16.mxu1 %v1759_v7  ;;  %335 = vmatmul.mubr.bf16.gmra.mrb[8].mxu0 %v160_v11 }
  0x33   :  { %344 = vmatprep.mubr.bf16.mxu0 %v1801_v2 }
  0x35   :  { %1531 = vmatpush3.bf16.msra.mxu1 %v1760_v10 }
  0x36   :  { %1532 = vmatprep.subr.bf16.mxu1 %v1761_v12 }
  0x37   :  { %12 = vsyncpa [#allocation4], 0  ;;  %v161_v18 = vpack.c.bf16 %v133_v14, %v132_v13  ;;  %v156_v19 = vld [vmem:[#allocation2 + $0xf0] sm:$0xff]  ;;  %v157_v20 = vld [vmem:[#allocation2 + $0xf8] sm:$0xff]  ;;  %v192_v50 = vlaneseq }
  0x38   :  { %455 = vmatmul.mubr.bf16.gmra.mrb[8].mxu1 %v172_v16  ;;  %v1764_v21 = vld [vmem:[%s2326_s3 + $0x28] sm:$0xff]   ;;  %v173_v22 = vpack.c.bf16 %v157_v20, %v156_v19  ;;  %v134_v23 = vld [vmem:[#allocation2 + $0x40] sm:$0xff]  ;;  %v136_v26 = vld [vmem:[#allocation2 + $0x50] sm:$0xff] }
  0x39   :  { %464 = vmatprep.mubr.bf16.mxu1 %v1801_v2  ;;  %1533 = vmatpush3.bf16.msra.mxu1 %v1762_v15  ;;  %v135_v24 = vld [vmem:[#allocation2 + $0x48] sm:$0xff]  ;;  %v137_v27 = vld [vmem:[#allocation2 + $0x58] sm:$0xff]  ;;  %v138_v29 = vld [vmem:[#allocation2 + $0x60] sm:$0xff]  ;;  %v193_v51 = vshrl.u32 %v192_v50, 7 }
  0x3a   :  { %1534 = vmatprep.subr.bf16.mxu1 %v1763_v17  ;;  %345 = vmatmul.mubr.bf16.gmra.mrb[12].mxu0 %v161_v18  ;;  %v162_v25 = vpack.c.bf16 %v135_v24, %v134_v23  ;;  %v163_v28 = vpack.c.bf16 %v137_v27, %v136_v26  ;;  %v139_v30 = vld [vmem:[#allocation2 + $0x68] sm:$0xff]  ;;  %v140_v32 = vld [vmem:[#allocation2 + $0x70] sm:$0xff]  ;;  %v141_v33 = vld [vmem:[#allocation2 + $0x78] sm:$0xff] }
  0x3b   :  { %354 = vmatprep.mubr.bf16.mxu0 %v1801_v2  ;;  %v164_v31 = vpack.c.bf16 %v139_v30, %v138_v29  ;;  %v165_v34 = vpack.c.bf16 %v141_v33, %v140_v32  ;;  %v142_v35 = vld [vmem:[#allocation2 + $0x80] sm:$0xff]  ;;  %v143_v36 = vld [vmem:[#allocation2 + $0x88] sm:$0xff]  ;;  %v144_v38 = vld [vmem:[#allocation2 + $0x90] sm:$0xff]  ;;  %v194_v52 = vsub.s32 0, %v193_v51  ;;  %v198_v54 = vsub.s32 1, %v193_v51 }
  0x3c   :  { %v166_v37 = vpack.c.bf16 %v143_v36, %v142_v35  ;;  %v145_v39 = vld [vmem:[#allocation2 + $0x98] sm:$0xff]  ;;  %v146_v41 = vld [vmem:[#allocation2 + $0xa0] sm:$0xff]  ;;  %v147_v42 = vld [vmem:[#allocation2 + $0xa8] sm:$0xff] }
  0x3d   :  { %1535 = vmatpush3.bf16.msra.mxu1 %v1764_v21  ;;  %v167_v40 = vpack.c.bf16 %v145_v39, %v144_v38  ;;  %v168_v43 = vpack.c.bf16 %v147_v42, %v146_v41  ;;  %v148_v44 = vld [vmem:[#allocation2 + $0xb0] sm:$0xff]  ;;  %v149_v45 = vld [vmem:[#allocation2 + $0xb8] sm:$0xff]  ;;  %v190_v53 = vld [vmem:[%s2325_s2] sm:$0x3] }
  0x3e   :  { %v169_v46 = vpack.c.bf16 %v149_v45, %v148_v44  ;;  %v1765_v47 = vld [vmem:[%s2326_s3 + $0x70] sm:$0xff]   ;;  %v1767_v49 = vld [vmem:[%s2326_s3 + $0x78] sm:$0xff]   ;;  %v2121_v55 = vrot.slane %v190_v53, %v194_v52  ;;  %v2123_v56 = vrot.slane %v190_v53, %v198_v54  ;;  %v1769_v0 = vld [vmem:[%s2328_s5] sm:$0xff]  }
  0x3f   :  { %v1766_v48 = vld [vmem:[%s2326_s3 + $0x30] sm:$0xff]   ;;  %1536 = vmatprep.subr.bf16.mxu1 %v1765_v47  ;;  %v1770_v1 = vld [vmem:[%s2328_s5 + $0x8] sm:$0xff]   ;;  %1660 = vmatprep.subr.bf16.mxu0 %v1769_v0 }
  0x40   :  { %465 = vmatmul.mubr.bf16.gmra.mrb[12].mxu1 %v173_v22  ;;  %1661 = vmatpush3.bf16.msra.mxu0 %v1769_v0  ;;  %v1771_v17 = vld [vmem:[%s2328_s5 + $0x10] sm:$0xff]  }
  0x41   :  { %1537 = vmatpush3.bf16.msra.mxu1 %v1766_v48  ;;  %1662 = vmatprep.subr.bf16.mxu0 %v1770_v1 }
  0x42   :  { %355 = vmatmul.mubr.bf16.gmra.mrb[16].mxu0 %v162_v25  ;;  %1538 = vmatprep.subr.bf16.mxu1 %v1767_v49 }
  0x43   :  { %364 = vmatprep.mubr.bf16.mxu0 %v1801_v2 }
  0x44   :  { %1663 = vmatpush3.bf16.msra.mxu0 %v1770_v1 }
  0x45   :  { %1664 = vmatprep.subr.bf16.mxu0 %v1771_v17 }
  0x48   :  { %1665 = vmatpush3.bf16.msra.mxu0 %v1771_v17 }
  0x4a   :  { %365 = vmatmul.mubr.bf16.gmra.mrb[20].mxu0 %v163_v28 }
  0x4b   :  { %374 = vmatprep.mubr.bf16.mxu0 %v1801_v2 }
  0x52   :  { %375 = vmatmul.mubr.bf16.gmra.mrb[24].mxu0 %v164_v31 }
  0x53   :  { %384 = vmatprep.mubr.bf16.mxu0 %v1801_v2 }
  0x5a   :  { %385 = vmatmul.mubr.bf16.gmra.mrb[28].mxu0 %v165_v34 }
  0x5b   :  { %394 = vmatprep.mubr.bf16.mxu0 %v1801_v2 }
  0x62   :  { %395 = vmatmul.mubr.bf16.gmra.mrb[32].mxu0 %v166_v37 }
  0x63   :  { %404 = vmatprep.mubr.bf16.mxu0 %v1801_v2 }
  0x6a   :  { %405 = vmatmul.mubr.bf16.gmra.mrb[36].mxu0 %v167_v40 }
  0x6b   :  { %414 = vmatprep.mubr.bf16.mxu0 %v1801_v2 }
  0x72   :  { %415 = vmatmul.mubr.bf16.gmra.mrb[40].mxu0 %v168_v43 }
  0x73   :  { %424 = vmatprep.mubr.bf16.mxu0 %v1801_v2  ;;  %v1768_v2 = vld [vmem:[%s2326_s3 + $0x38] sm:$0xff]  }
  0x74   :  { %1539 = vmatpush3.bf16.msra.mxu1 %v1768_v2 }
  0x7a   :  { %425 = vmatmul.mubr.bf16.gmra.mrb[44].mxu0 %v169_v46 }
  0xf5   :  { %v316_v57 = vpop.f32.mrb[0].mxu0 }
  0xf6   :  { %v317_v58 = vadd.f32 %v316_v57, %v2121_v55  ;;  %v318_v59 = vpop.f32.mrb[1].mxu0 }
  0xf7   :  { %v319_v60 = vadd.f32 %v318_v59, %v2123_v56  ;;  %v320_v61 = vpop.f32.mrb[2].mxu0 }
  0xf8   :  { %v321_v62 = vadd.f32 %v320_v61, %v2121_v55  ;;  %v322_v63 = vpop.f32.mrb[3].mxu0  ;;  %v475_v5 = vmax.f32 %v317_v58, 0.0 }
  0xf9   :  { %v323_v3 = vadd.f32 %v322_v63, %v2123_v56  ;;  %v476_v9 = vmax.f32 %v319_v60, 0.0 }
  0xfa   :  { %v477_v6 = vmax.f32 %v321_v62, 0.0 }
  0xfb   :  { %v436_v4 = vpop.f32.mrb[0].mxu1  ;;  %v478_v10 = vmax.f32 %v323_v3, 0.0 }
  0xfc   :  { %v437_v7 = vadd.f32 %v436_v4, %v2121_v55  ;;  %v438_v8 = vpop.f32.mrb[1].mxu1  ;;  %v539_v13 = vpack.c.bf16 %v477_v6, %v475_v5 }
  0xfd   :  { %v439_v11 = vadd.f32 %v438_v8, %v2123_v56  ;;  %v440_v12 = vpop.f32.mrb[2].mxu1  ;;  %v540_v18 = vpack.c.bf16 %v478_v10, %v476_v9  ;;  %v326_v19 = vpop.f32.mrb[4].mxu0 }
  0xfe   :  { %v523_v14 = vmax.f32 %v437_v7, 0.0  ;;  %v441_v15 = vadd.f32 %v440_v12, %v2121_v55  ;;  %v442_v16 = vpop.f32.mrb[3].mxu1  ;;  %v327_v22 = vadd.f32 %v326_v19, %v2121_v55  ;;  %v328_v23 = vpop.f32.mrb[5].mxu0 }
  0xff   :  { %v524_v20 = vmax.f32 %v439_v11, 0.0  ;;  %v443_v21 = vadd.f32 %v442_v16, %v2123_v56  ;;  %v329_v25 = vadd.f32 %v328_v23, %v2123_v56  ;;  %v330_v26 = vpop.f32.mrb[6].mxu0  ;;  %738 = vmatprep.mubr.bf16.mxu1 %v540_v18 }
 0x100   :  { %v525_v24 = vmax.f32 %v441_v15, 0.0  ;;  %v331_v28 = vadd.f32 %v330_v26, %v2121_v55  ;;  %v332_v29 = vpop.f32.mrb[7].mxu0  ;;  %739 = vmatmul.mubr.bf16.vlgmr.msra.gmra.mrb[16].mxu1 %v539_v13  ;;  %v479_v34 = vmax.f32 %v327_v22, 0.0 }
 0x101   :  { %v526_v27 = vmax.f32 %v443_v21, 0.0  ;;  %v333_v31 = vadd.f32 %v332_v29, %v2123_v56  ;;  %v480_v38 = vmax.f32 %v329_v25, 0.0 }
 0x102   :  { %v2145_v30 = vpack.c.bf16 %v525_v24, %v523_v14  ;;  %v481_v35 = vmax.f32 %v331_v28, 0.0 }
 0x103   :  { %v2148_v32 = vpack.c.bf16 %v526_v27, %v524_v20  ;;  %v446_v33 = vpop.f32.mrb[4].mxu1  ;;  %v482_v39 = vmax.f32 %v333_v31, 0.0 }
 0x104   :  { %v447_v36 = vadd.f32 %v446_v33, %v2121_v55  ;;  %v448_v37 = vpop.f32.mrb[5].mxu1  ;;  %v541_v42 = vpack.c.bf16 %v481_v35, %v479_v34 }
 0x105   :  { %v449_v40 = vadd.f32 %v448_v37, %v2123_v56  ;;  %v450_v41 = vpop.f32.mrb[6].mxu1  ;;  %v542_v46 = vpack.c.bf16 %v482_v39, %v480_v38  ;;  %v336_v47 = vpop.f32.mrb[8].mxu0 }
 0x106   :  { %v527_v43 = vmax.f32 %v447_v36, 0.0  ;;  %v451_v44 = vadd.f32 %v450_v41, %v2121_v55  ;;  %v452_v45 = vpop.f32.mrb[7].mxu1  ;;  %v337_v2 = vadd.f32 %v336_v47, %v2121_v55  ;;  %v338_v50 = vpop.f32.mrb[9].mxu0 }
 0x107   :  { %v528_v48 = vmax.f32 %v449_v40, 0.0  ;;  %v453_v49 = vadd.f32 %v452_v45, %v2123_v56  ;;  %v339_v52 = vadd.f32 %v338_v50, %v2123_v56  ;;  %v340_v53 = vpop.f32.mrb[10].mxu0  ;;  %746 = vmatprep.mubr.bf16.mxu1 %v542_v46 }
 0x108   :  { %v529_v51 = vmax.f32 %v451_v44, 0.0  ;;  %v341_v57 = vadd.f32 %v340_v53, %v2121_v55  ;;  %v342_v58 = vpop.f32.mrb[11].mxu0  ;;  %747 = vmatmul.mubr.bf16.gmra.mrb[20].mxu1 %v541_v42  ;;  %v483_v63 = vmax.f32 %v337_v2, 0.0 }
 0x109   :  { %v530_v54 = vmax.f32 %v453_v49, 0.0  ;;  %v343_v60 = vadd.f32 %v342_v58, %v2123_v56  ;;  %v484_v4 = vmax.f32 %v339_v52, 0.0 }
 0x10a   :  { %v2157_v59 = vpack.c.bf16 %v529_v51, %v527_v43  ;;  %v485_v0 = vmax.f32 %v341_v57, 0.0 }
 0x10b   :  { %v2160_v61 = vpack.c.bf16 %v530_v54, %v528_v48  ;;  %v456_v62 = vpop.f32.mrb[8].mxu1  ;;  %v486_v5 = vmax.f32 %v343_v60, 0.0 }
 0x10c   :  { %v457_v1 = vadd.f32 %v456_v62, %v2121_v55  ;;  %v458_v3 = vpop.f32.mrb[9].mxu1  ;;  %v543_v8 = vpack.c.bf16 %v485_v0, %v483_v63 }
 0x10d   :  { %v459_v6 = vadd.f32 %v458_v3, %v2123_v56  ;;  %v460_v7 = vpop.f32.mrb[10].mxu1  ;;  %v544_v12 = vpack.c.bf16 %v486_v5, %v484_v4  ;;  %v346_v13 = vpop.f32.mrb[12].mxu0 }
 0x10e   :  { %v531_v9 = vmax.f32 %v457_v1, 0.0  ;;  %v461_v10 = vadd.f32 %v460_v7, %v2121_v55  ;;  %v462_v11 = vpop.f32.mrb[11].mxu1  ;;  %v347_v16 = vadd.f32 %v346_v13, %v2121_v55  ;;  %v348_v17 = vpop.f32.mrb[13].mxu0 }
 0x10f   :  { %v532_v14 = vmax.f32 %v459_v6, 0.0  ;;  %v463_v15 = vadd.f32 %v462_v11, %v2123_v56  ;;  %v349_v19 = vadd.f32 %v348_v17, %v2123_v56  ;;  %v350_v20 = vpop.f32.mrb[14].mxu0  ;;  %754 = vmatprep.mubr.bf16.mxu1 %v544_v12 }
 0x110   :  { %v533_v18 = vmax.f32 %v461_v10, 0.0  ;;  %v351_v22 = vadd.f32 %v350_v20, %v2121_v55  ;;  %v352_v23 = vpop.f32.mrb[15].mxu0  ;;  %755 = vmatmul.mubr.bf16.gmra.mrb[24].mxu1 %v543_v8  ;;  %v487_v28 = vmax.f32 %v347_v16, 0.0 }
 0x111   :  { %v534_v21 = vmax.f32 %v463_v15, 0.0  ;;  %v353_v25 = vadd.f32 %v352_v23, %v2123_v56  ;;  %v488_v34 = vmax.f32 %v349_v19, 0.0 }
 0x112   :  { %v2169_v24 = vpack.c.bf16 %v533_v18, %v531_v9  ;;  %v489_v29 = vmax.f32 %v351_v22, 0.0 }
 0x113   :  { %v2172_v26 = vpack.c.bf16 %v534_v21, %v532_v14  ;;  %v466_v27 = vpop.f32.mrb[12].mxu1  ;;  %v490_v35 = vmax.f32 %v353_v25, 0.0 }
 0x114   :  { %v467_v31 = vadd.f32 %v466_v27, %v2121_v55  ;;  %v468_v33 = vpop.f32.mrb[13].mxu1  ;;  %v545_v38 = vpack.c.bf16 %v489_v29, %v487_v28 }
 0x115   :  { %v469_v36 = vadd.f32 %v468_v33, %v2123_v56  ;;  %v470_v37 = vpop.f32.mrb[14].mxu1  ;;  %v546_v42 = vpack.c.bf16 %v490_v35, %v488_v34  ;;  %v356_v43 = vpop.f32.mrb[16].mxu0 }
 0x116   :  { %v535_v39 = vmax.f32 %v467_v31, 0.0  ;;  %v471_v40 = vadd.f32 %v470_v37, %v2121_v55  ;;  %v472_v41 = vpop.f32.mrb[15].mxu1  ;;  %v357_v46 = vadd.f32 %v356_v43, %v2121_v55  ;;  %v358_v47 = vpop.f32.mrb[17].mxu0 }
 0x117   :  { %v536_v44 = vmax.f32 %v469_v36, 0.0  ;;  %v473_v45 = vadd.f32 %v472_v41, %v2123_v56  ;;  %v359_v49 = vadd.f32 %v358_v47, %v2123_v56  ;;  %v360_v2 = vpop.f32.mrb[18].mxu0  ;;  %762 = vmatprep.mubr.bf16.mxu1 %v546_v42 }
 0x118   :  { %v537_v48 = vmax.f32 %v471_v40, 0.0  ;;  %v361_v51 = vadd.f32 %v360_v2, %v2121_v55  ;;  %v362_v52 = vpop.f32.mrb[19].mxu0  ;;  %763 = vmatmul.mubr.bf16.gmra.mrb[28].mxu1 %v545_v38  ;;  %v491_v58 = vmax.f32 %v357_v46, 0.0 }
 0x119   :  { %v538_v50 = vmax.f32 %v473_v45, 0.0  ;;  %v363_v54 = vadd.f32 %v362_v52, %v2123_v56  ;;  %v492_v62 = vmax.f32 %v359_v49, 0.0 }
 0x11a   :  { %v2181_v53 = vpack.c.bf16 %v537_v48, %v535_v39  ;;  %v493_v60 = vmax.f32 %v361_v51, 0.0 }
 0x11b   :  { %v2184_v57 = vpack.c.bf16 %v538_v50, %v536_v44  ;;  %v494_v63 = vmax.f32 %v363_v54, 0.0 }
 0x11c   :  { %v547_v0 = vpack.c.bf16 %v493_v60, %v491_v58 }
 0x11d   :  { %v548_v1 = vpack.c.bf16 %v494_v63, %v492_v62  ;;  %v366_v3 = vpop.f32.mrb[20].mxu0 }
 0x11e   :  { %v367_v4 = vadd.f32 %v366_v3, %v2121_v55  ;;  %v368_v5 = vpop.f32.mrb[21].mxu0 }
 0x11f   :  { %v369_v6 = vadd.f32 %v368_v5, %v2123_v56  ;;  %v370_v7 = vpop.f32.mrb[22].mxu0  ;;  %770 = vmatprep.mubr.bf16.mxu1 %v548_v1 }
 0x120   :  { %v371_v8 = vadd.f32 %v370_v7, %v2121_v55  ;;  %v372_v9 = vpop.f32.mrb[23].mxu0  ;;  %771 = vmatmul.mubr.bf16.gmra.mrb[32].mxu1 %v547_v0  ;;  %v495_v11 = vmax.f32 %v367_v4, 0.0 }
 0x121   :  { %v373_v10 = vadd.f32 %v372_v9, %v2123_v56  ;;  %v496_v13 = vmax.f32 %v369_v6, 0.0 }
 0x122   :  { %v497_v12 = vmax.f32 %v371_v8, 0.0 }
 0x123   :  { %v498_v14 = vmax.f32 %v373_v10, 0.0 }
 0x124   :  { %v549_v15 = vpack.c.bf16 %v497_v12, %v495_v11 }
 0x125   :  { %v550_v16 = vpack.c.bf16 %v498_v14, %v496_v13  ;;  %v376_v17 = vpop.f32.mrb[24].mxu0 }
 0x126   :  { %v377_v18 = vadd.f32 %v376_v17, %v2121_v55  ;;  %v378_v19 = vpop.f32.mrb[25].mxu0 }
 0x127   :  { %v379_v20 = vadd.f32 %v378_v19, %v2123_v56  ;;  %v380_v21 = vpop.f32.mrb[26].mxu0  ;;  %778 = vmatprep.mubr.bf16.mxu1 %v550_v16 }
 0x128   :  { %v381_v22 = vadd.f32 %v380_v21, %v2121_v55  ;;  %v382_v23 = vpop.f32.mrb[27].mxu0  ;;  %779 = vmatmul.mubr.bf16.gmra.mrb[36].mxu1 %v549_v15  ;;  %v499_v27 = vmax.f32 %v377_v18, 0.0 }
 0x129   :  { %v383_v25 = vadd.f32 %v382_v23, %v2123_v56  ;;  %v500_v29 = vmax.f32 %v379_v20, 0.0 }
 0x12a   :  { %v501_v28 = vmax.f32 %v381_v22, 0.0 }
 0x12b   :  { %v502_v31 = vmax.f32 %v383_v25, 0.0 }
 0x12c   :  { %v551_v33 = vpack.c.bf16 %v501_v28, %v499_v27 }
 0x12d   :  { %v552_v34 = vpack.c.bf16 %v502_v31, %v500_v29  ;;  %v386_v35 = vpop.f32.mrb[28].mxu0 }
 0x12e   :  { %v387_v36 = vadd.f32 %v386_v35, %v2121_v55  ;;  %v388_v37 = vpop.f32.mrb[29].mxu0 }
 0x12f   :  { %v389_v38 = vadd.f32 %v388_v37, %v2123_v56  ;;  %v390_v39 = vpop.f32.mrb[30].mxu0  ;;  %786 = vmatprep.mubr.bf16.mxu1 %v552_v34 }
 0x130   :  { %v391_v40 = vadd.f32 %v390_v39, %v2121_v55  ;;  %v392_v41 = vpop.f32.mrb[31].mxu0  ;;  %787 = vmatmul.mubr.bf16.gmra.mrb[40].mxu1 %v551_v33  ;;  %v503_v43 = vmax.f32 %v387_v36, 0.0 }
 0x131   :  { %v393_v42 = vadd.f32 %v392_v41, %v2123_v56  ;;  %v504_v45 = vmax.f32 %v389_v38, 0.0 }
 0x132   :  { %v505_v44 = vmax.f32 %v391_v40, 0.0 }
 0x133   :  { %v506_v46 = vmax.f32 %v393_v42, 0.0 }
 0x134   :  { %v553_v47 = vpack.c.bf16 %v505_v44, %v503_v43 }
 0x135   :  { %v554_v48 = vpack.c.bf16 %v506_v46, %v504_v45  ;;  %v396_v49 = vpop.f32.mrb[32].mxu0  ;;  %v1772_v45 = vld [vmem:[%s2328_s5 + $0x18] sm:$0xff]  }
 0x136   :  { %v397_v2 = vadd.f32 %v396_v49, %v2121_v55  ;;  %v398_v50 = vpop.f32.mrb[33].mxu0  ;;  %1666 = vmatprep.subr.bf16.mxu0 %v1772_v45 }
 0x137   :  { %v399_v51 = vadd.f32 %v398_v50, %v2123_v56  ;;  %v400_v52 = vpop.f32.mrb[34].mxu0  ;;  %794 = vmatprep.mubr.bf16.mxu1 %v554_v48  ;;  %1667 = vmatpush3.bf16.msra.mxu0 %v1772_v45 }
 0x138   :  { %v401_v54 = vadd.f32 %v400_v52, %v2121_v55  ;;  %v402_v58 = vpop.f32.mrb[35].mxu0  ;;  %795 = vmatmul.mubr.bf16.gmra.mrb[44].mxu1 %v553_v47  ;;  %v507_v62 = vmax.f32 %v397_v2, 0.0 }
 0x139   :  { %v403_v60 = vadd.f32 %v402_v58, %v2123_v56  ;;  %v508_v0 = vmax.f32 %v399_v51, 0.0  ;;  %v1775_v51 = vld [vmem:[%s2328_s5 + $0x30] sm:$0xff]  }
 0x13a   :  { %v509_v63 = vmax.f32 %v401_v54, 0.0 }
 0x13b   :  { %v510_v1 = vmax.f32 %v403_v60, 0.0 }
 0x13c   :  { %v555_v3 = vpack.c.bf16 %v509_v63, %v507_v62 }
 0x13d   :  { %v556_v4 = vpack.c.bf16 %v510_v1, %v508_v0  ;;  %v406_v5 = vpop.f32.mrb[36].mxu0 }
 0x13e   :  { %v407_v6 = vadd.f32 %v406_v5, %v2121_v55  ;;  %v408_v7 = vpop.f32.mrb[37].mxu0 }
 0x13f   :  { %v409_v8 = vadd.f32 %v408_v7, %v2123_v56  ;;  %v410_v9 = vpop.f32.mrb[38].mxu0  ;;  %802 = vmatprep.mubr.bf16.mxu1 %v556_v4 }
 0x140   :  { %v411_v10 = vadd.f32 %v410_v9, %v2121_v55  ;;  %v412_v11 = vpop.f32.mrb[39].mxu0  ;;  %803 = vmatmul.mubr.bf16.gmra.mrb[48].mxu1 %v555_v3  ;;  %v511_v13 = vmax.f32 %v407_v6, 0.0 }
 0x141   :  { %v413_v12 = vadd.f32 %v412_v11, %v2123_v56  ;;  %v512_v15 = vmax.f32 %v409_v8, 0.0 }
 0x142   :  { %v513_v14 = vmax.f32 %v411_v10, 0.0 }
 0x143   :  { %v514_v16 = vmax.f32 %v413_v12, 0.0 }
 0x144   :  { %v557_v17 = vpack.c.bf16 %v513_v14, %v511_v13 }
 0x145   :  { %v558_v18 = vpack.c.bf16 %v514_v16, %v512_v15  ;;  %v416_v19 = vpop.f32.mrb[40].mxu0 }
 0x146   :  { %v417_v20 = vadd.f32 %v416_v19, %v2121_v55  ;;  %v418_v21 = vpop.f32.mrb[41].mxu0 }
 0x147   :  { %v419_v22 = vadd.f32 %v418_v21, %v2123_v56  ;;  %v420_v23 = vpop.f32.mrb[42].mxu0  ;;  %810 = vmatprep.mubr.bf16.mxu1 %v558_v18 }
 0x148   :  { %v421_v25 = vadd.f32 %v420_v23, %v2121_v55  ;;  %v422_v27 = vpop.f32.mrb[43].mxu0  ;;  %811 = vmatmul.mubr.bf16.gmra.mrb[52].mxu1 %v557_v17  ;;  %v515_v29 = vmax.f32 %v417_v20, 0.0 }
 0x149   :  { %v423_v28 = vadd.f32 %v422_v27, %v2123_v56  ;;  %v516_v33 = vmax.f32 %v419_v22, 0.0 }
 0x14a   :  { %v517_v31 = vmax.f32 %v421_v25, 0.0 }
 0x14b   :  { %v518_v34 = vmax.f32 %v423_v28, 0.0 }
 0x14c   :  { %v559_v35 = vpack.c.bf16 %v517_v31, %v515_v29 }
 0x14d   :  { %v560_v36 = vpack.c.bf16 %v518_v34, %v516_v33  ;;  %v426_v37 = vpop.f32.mrb[44].mxu0 }
 0x14e   :  { %v427_v38 = vadd.f32 %v426_v37, %v2121_v55  ;;  %v428_v39 = vpop.f32.mrb[45].mxu0 }
 0x14f   :  { %v429_v40 = vadd.f32 %v428_v39, %v2123_v56  ;;  %v430_v41 = vpop.f32.mrb[46].mxu0  ;;  %818 = vmatprep.mubr.bf16.mxu1 %v560_v36 }
 0x150   :  { %v431_v42 = vadd.f32 %v430_v41, %v2121_v55  ;;  %v432_v43 = vpop.f32.mrb[47].mxu0  ;;  %819 = vmatmul.mubr.bf16.gmra.mrb[56].mxu1 %v559_v35  ;;  %v519_v46 = vmax.f32 %v427_v38, 0.0  ;;  %v1773_v55 = vld [vmem:[%s2328_s5 + $0x20] sm:$0xff]  }
 0x151   :  { %v433_v44 = vadd.f32 %v432_v43, %v2123_v56  ;;  %v520_v48 = vmax.f32 %v429_v40, 0.0  ;;  %1668 = vmatprep.subr.bf16.mxu0 %v1773_v55  ;;  %v1774_v56 = vld [vmem:[%s2328_s5 + $0x28] sm:$0xff]  }
 0x152   :  { %v521_v47 = vmax.f32 %v431_v42, 0.0  ;;  %1669 = vmatpush3.bf16.msra.mxu0 %v1773_v55 }
 0x153   :  { %v522_v49 = vmax.f32 %v433_v44, 0.0  ;;  %1670 = vmatprep.subr.bf16.mxu0 %v1774_v56 }
 0x154   :  { %v561_v2 = vpack.c.bf16 %v521_v47, %v519_v46 }
 0x155   :  { %v562_v50 = vpack.c.bf16 %v522_v49, %v520_v48 }
 0x156   :  { %1671 = vmatpush3.bf16.msra.mxu0 %v1774_v56 }
 0x157   :  { %826 = vmatprep.mubr.bf16.mxu1 %v562_v50  ;;  %1672 = vmatprep.subr.bf16.mxu0 %v1775_v51 }
 0x158   :  { %827 = vmatmul.mubr.bf16.gmra.mrb[60].mxu1 %v561_v2 }
 0x159   :  { %834 = vmatprep.mubr.bf16.mxu1 %v2148_v32  ;;  %v1776_v32 = vld [vmem:[%s2328_s5 + $0x38] sm:$0xff]  }
 0x15a   :  { %1673 = vmatpush3.bf16.msra.mxu0 %v1775_v51 }
 0x15b   :  { %1674 = vmatprep.subr.bf16.mxu0 %v1776_v32 }
 0x15e   :  { %1675 = vmatpush3.bf16.msra.mxu0 %v1776_v32 }
 0x160   :  { %835 = vmatmul.mubr.bf16.gmra.mrb[64].mxu1 %v2145_v30 }
 0x161   :  { %842 = vmatprep.mubr.bf16.mxu1 %v2160_v61  ;;  %v2240_v61 = vld [vmem:[%s2327_s4] ss:$0 sm:$0xff] }
 0x168   :  { %843 = vmatmul.mubr.bf16.gmra.mrb[68].mxu1 %v2157_v59 }
 0x169   :  { %850 = vmatprep.mubr.bf16.mxu1 %v2172_v26 }
 0x170   :  { %851 = vmatmul.mubr.bf16.gmra.mrb[72].mxu1 %v2169_v24 }
 0x171   :  { %858 = vmatprep.mubr.bf16.mxu1 %v2184_v57 }
 0x178   :  { %859 = vmatmul.mubr.bf16.gmra.mrb[76].mxu1 %v2181_v53 }
 0x1d3   :  { %v1540_v30 = vpop.f32.mrb[16].mxu1 }
 0x1d4   :  { %v1541_v52 = vpop.f32.mrb[17].mxu1 }
 0x1d5   :  { %v1542_v54 = vadd.f32 %v1541_v52, %v1540_v30  ;;  %v1543_v58 = vpop.f32.mrb[18].mxu1 }
 0x1d6   :  { %v1544_v60 = vpop.f32.mrb[19].mxu1 }
 0x1d7   :  { %v741_v59 = vadd.f32 %v1542_v54, %v2240_v61  ;;  %v1545_v62 = vadd.f32 %v1544_v60, %v1543_v58 }
 0x1d9   :  { %v744_v26 = vadd.f32 %v1545_v62, %v2240_v61  ;;  %v867_v24 = vmax.f32 %v741_v59, 0.0 }
 0x1db   :  { %v868_v63 = vmax.f32 %v744_v26, 0.0  ;;  %v1546_v57 = vpop.f32.mrb[20].mxu1 }
 0x1dc   :  { %v1547_v0 = vpop.f32.mrb[21].mxu1 }
 0x1dd   :  { %v1548_v53 = vadd.f32 %v1547_v0, %v1546_v57  ;;  %v1549_v1 = vpop.f32.mrb[22].mxu1  ;;  %v899_v3 = vpack.c.bf16 %v868_v63, %v867_v24 }
 0x1de   :  { %v1550_v4 = vpop.f32.mrb[23].mxu1 }
 0x1df   :  { %v749_v5 = vadd.f32 %v1548_v53, %v2240_v61  ;;  %v1551_v6 = vadd.f32 %v1550_v4, %v1549_v1  ;;  %1676 = vmatprep.mubr.bf16.mxu0 %v899_v3 }
 0x1e1   :  { %v752_v7 = vadd.f32 %v1551_v6, %v2240_v61  ;;  %v869_v8 = vmax.f32 %v749_v5, 0.0 }
 0x1e3   :  { %v870_v9 = vmax.f32 %v752_v7, 0.0  ;;  %v1552_v10 = vpop.f32.mrb[24].mxu1 }
 0x1e4   :  { %v1553_v11 = vpop.f32.mrb[25].mxu1 }
 0x1e5   :  { %v900_v12 = vpack.c.bf16 %v870_v9, %v869_v8  ;;  %v1554_v13 = vadd.f32 %v1553_v11, %v1552_v10  ;;  %v1555_v14 = vpop.f32.mrb[26].mxu1 }
 0x1e6   :  { %v1556_v15 = vpop.f32.mrb[27].mxu1 }
 0x1e7   :  { %v757_v16 = vadd.f32 %v1554_v13, %v2240_v61  ;;  %v1557_v17 = vadd.f32 %v1556_v15, %v1555_v14  ;;  %1677 = vmatmul.mubr.bf16.vlgmr.msra.gmra.mrb[48].mxu0 %v900_v12 }
 0x1e9   :  { %v760_v18 = vadd.f32 %v1557_v17, %v2240_v61  ;;  %v871_v19 = vmax.f32 %v757_v16, 0.0 }
 0x1eb   :  { %v872_v20 = vmax.f32 %v760_v18, 0.0  ;;  %v1558_v21 = vpop.f32.mrb[28].mxu1 }
 0x1ec   :  { %v1559_v22 = vpop.f32.mrb[29].mxu1 }
 0x1ed   :  { %v1560_v23 = vadd.f32 %v1559_v22, %v1558_v21  ;;  %v1561_v25 = vpop.f32.mrb[30].mxu1  ;;  %v901_v27 = vpack.c.bf16 %v872_v20, %v871_v19 }
 0x1ee   :  { %v1562_v28 = vpop.f32.mrb[31].mxu1 }
 0x1ef   :  { %v765_v29 = vadd.f32 %v1560_v23, %v2240_v61  ;;  %v1563_v31 = vadd.f32 %v1562_v28, %v1561_v25  ;;  %1680 = vmatprep.mubr.bf16.mxu0 %v901_v27 }
 0x1f1   :  { %v768_v33 = vadd.f32 %v1563_v31, %v2240_v61  ;;  %v873_v34 = vmax.f32 %v765_v29, 0.0 }
 0x1f3   :  { %v874_v35 = vmax.f32 %v768_v33, 0.0  ;;  %v1564_v36 = vpop.f32.mrb[32].mxu1 }
 0x1f4   :  { %v1565_v37 = vpop.f32.mrb[33].mxu1 }
 0x1f5   :  { %v1566_v38 = vadd.f32 %v1565_v37, %v1564_v36  ;;  %v1567_v39 = vpop.f32.mrb[34].mxu1  ;;  %v902_v40 = vpack.c.bf16 %v874_v35, %v873_v34 }
 0x1f6   :  { %v1568_v41 = vpop.f32.mrb[35].mxu1 }
 0x1f7   :  { %v773_v42 = vadd.f32 %v1566_v38, %v2240_v61  ;;  %v1569_v43 = vadd.f32 %v1568_v41, %v1567_v39  ;;  %1681 = vmatmul.mubr.bf16.gmra.mrb[52].mxu0 %v902_v40 }
 0x1f9   :  { %v776_v44 = vadd.f32 %v1569_v43, %v2240_v61  ;;  %v875_v45 = vmax.f32 %v773_v42, 0.0 }
 0x1fb   :  { %v876_v46 = vmax.f32 %v776_v44, 0.0  ;;  %v1570_v47 = vpop.f32.mrb[36].mxu1 }
 0x1fc   :  { %v1571_v48 = vpop.f32.mrb[37].mxu1 }
 0x1fd   :  { %v1572_v49 = vadd.f32 %v1571_v48, %v1570_v47  ;;  %v1573_v2 = vpop.f32.mrb[38].mxu1  ;;  %v903_v50 = vpack.c.bf16 %v876_v46, %v875_v45 }
 0x1fe   :  { %v1574_v55 = vpop.f32.mrb[39].mxu1 }
 0x1ff   :  { %v781_v56 = vadd.f32 %v1572_v49, %v2240_v61  ;;  %v1575_v51 = vadd.f32 %v1574_v55, %v1573_v2  ;;  %1684 = vmatprep.mubr.bf16.mxu0 %v903_v50 }
 0x201   :  { %v784_v32 = vadd.f32 %v1575_v51, %v2240_v61  ;;  %v877_v30 = vmax.f32 %v781_v56, 0.0 }
 0x203   :  { %v878_v52 = vmax.f32 %v784_v32, 0.0  ;;  %v1576_v54 = vpop.f32.mrb[40].mxu1 }
 0x204   :  { %v1577_v58 = vpop.f32.mrb[41].mxu1 }
 0x205   :  { %v1578_v60 = vadd.f32 %v1577_v58, %v1576_v54  ;;  %v1579_v59 = vpop.f32.mrb[42].mxu1  ;;  %v904_v62 = vpack.c.bf16 %v878_v52, %v877_v30 }
 0x206   :  { %v1580_v26 = vpop.f32.mrb[43].mxu1 }
 0x207   :  { %v789_v24 = vadd.f32 %v1578_v60, %v2240_v61  ;;  %v1581_v63 = vadd.f32 %v1580_v26, %v1579_v59  ;;  %1685 = vmatmul.mubr.bf16.gmra.mrb[56].mxu0 %v904_v62 }
 0x209   :  { %v792_v57 = vadd.f32 %v1581_v63, %v2240_v61  ;;  %v879_v0 = vmax.f32 %v789_v24, 0.0 }
 0x20b   :  { %v880_v53 = vmax.f32 %v792_v57, 0.0  ;;  %v1582_v1 = vpop.f32.mrb[44].mxu1 }
 0x20c   :  { %v1583_v3 = vpop.f32.mrb[45].mxu1 }
 0x20d   :  { %v1584_v4 = vadd.f32 %v1583_v3, %v1582_v1  ;;  %v1585_v5 = vpop.f32.mrb[46].mxu1  ;;  %v905_v6 = vpack.c.bf16 %v880_v53, %v879_v0 }
 0x20e   :  { %v1586_v7 = vpop.f32.mrb[47].mxu1 }
 0x20f   :  { %v797_v8 = vadd.f32 %v1584_v4, %v2240_v61  ;;  %v1587_v9 = vadd.f32 %v1586_v7, %v1585_v5  ;;  %1688 = vmatprep.mubr.bf16.mxu0 %v905_v6 }
 0x211   :  { %v800_v10 = vadd.f32 %v1587_v9, %v2240_v61  ;;  %v881_v11 = vmax.f32 %v797_v8, 0.0 }
 0x213   :  { %v882_v12 = vmax.f32 %v800_v10, 0.0  ;;  %v1588_v13 = vpop.f32.mrb[48].mxu1 }
 0x214   :  { %v1589_v14 = vpop.f32.mrb[49].mxu1 }
 0x215   :  { %v1590_v15 = vadd.f32 %v1589_v14, %v1588_v13  ;;  %v1591_v16 = vpop.f32.mrb[50].mxu1  ;;  %v906_v17 = vpack.c.bf16 %v882_v12, %v881_v11 }
 0x216   :  { %v1592_v18 = vpop.f32.mrb[51].mxu1 }
 0x217   :  { %v805_v19 = vadd.f32 %v1590_v15, %v2240_v61  ;;  %v1593_v20 = vadd.f32 %v1592_v18, %v1591_v16  ;;  %1689 = vmatmul.mubr.bf16.gmra.mrb[60].mxu0 %v906_v17 }
 0x219   :  { %v808_v21 = vadd.f32 %v1593_v20, %v2240_v61  ;;  %v883_v22 = vmax.f32 %v805_v19, 0.0 }
 0x21b   :  { %v884_v23 = vmax.f32 %v808_v21, 0.0  ;;  %v1594_v25 = vpop.f32.mrb[52].mxu1 }
 0x21c   :  { %v1595_v27 = vpop.f32.mrb[53].mxu1 }
 0x21d   :  { %v1596_v28 = vadd.f32 %v1595_v27, %v1594_v25  ;;  %v1597_v29 = vpop.f32.mrb[54].mxu1  ;;  %v907_v31 = vpack.c.bf16 %v884_v23, %v883_v22 }
 0x21e   :  { %v1598_v33 = vpop.f32.mrb[55].mxu1 }
 0x21f   :  { %v813_v34 = vadd.f32 %v1596_v28, %v2240_v61  ;;  %v1599_v35 = vadd.f32 %v1598_v33, %v1597_v29  ;;  %1692 = vmatprep.mubr.bf16.mxu0 %v907_v31 }
 0x221   :  { %v816_v36 = vadd.f32 %v1599_v35, %v2240_v61  ;;  %v885_v37 = vmax.f32 %v813_v34, 0.0 }
 0x223   :  { %v886_v38 = vmax.f32 %v816_v36, 0.0  ;;  %v1600_v39 = vpop.f32.mrb[56].mxu1 }
 0x224   :  { %v1601_v40 = vpop.f32.mrb[57].mxu1 }
 0x225   :  { %v1602_v41 = vadd.f32 %v1601_v40, %v1600_v39  ;;  %v1603_v42 = vpop.f32.mrb[58].mxu1  ;;  %v908_v43 = vpack.c.bf16 %v886_v38, %v885_v37 }
 0x226   :  { %v1604_v44 = vpop.f32.mrb[59].mxu1 }
 0x227   :  { %v821_v45 = vadd.f32 %v1602_v41, %v2240_v61  ;;  %v1605_v46 = vadd.f32 %v1604_v44, %v1603_v42  ;;  %1693 = vmatmul.mubr.bf16.gmra.mrb[64].mxu0 %v908_v43  ;;  %v2277_v44 = vld [vmem:[%s2329_s6] ss:$0 sm:$0xff]  ;;  %s1803_s6 = smov [#allocation3]  }
 0x228   :  { %s1312_s27 = sshll.u32 %s1803_s6, 4  ;;  %s1313_s27 = int_to_ptr.vmem [resolvable:$true] %s1312_s27 }
 0x229   :  { %v824_v47 = vadd.f32 %v1605_v46, %v2240_v61  ;;  %v887_v48 = vmax.f32 %v821_v45, 0.0  ;;  %s1777_s28 = scalar_lea.vmem %s1313_s27, 2048  ;;  %p1782_p1 = scmp.lt.s32.totalorder %s1313_s27, %s1313_s27 }
 0x22a   :  { %p1778_p0 = scmp.ne.s32.totalorder %s1313_s27, %s1777_s28  ;;  %p1783_p2 = scmp.lt.s32.totalorder %s1777_s28, %s1777_s28 }
 0x22b   :  { %v888_v49 = vmax.f32 %v824_v47, 0.0  ;;  %v1606_v2 = vpop.f32.mrb[60].mxu1 }
 0x22c   :  { %v1607_v50 = vpop.f32.mrb[61].mxu1  ;;  %p1784_p3 = por %p1783_p2, %p1782_p1 }
 0x22d   :  { %v1608_v55 = vadd.f32 %v1607_v50, %v1606_v2  ;;  %v1609_v56 = vpop.f32.mrb[62].mxu1  ;;  %v909_v51 = vpack.c.bf16 %v888_v49, %v887_v48 }
 0x22e   :  { %v1610_v32 = vpop.f32.mrb[63].mxu1  ;;  %p1785_p4 = pnand %p1784_p3, %p1778_p0 }
 0x22f   :  { %v829_v30 = vadd.f32 %v1608_v55, %v2240_v61  ;;  %v1611_v52 = vadd.f32 %v1610_v32, %v1609_v56  ;;  %1696 = vmatprep.mubr.bf16.mxu0 %v909_v51 }
 0x231   :  { %v832_v54 = vadd.f32 %v1611_v52, %v2240_v61  ;;  %v889_v58 = vmax.f32 %v829_v30, 0.0 }
 0x233   :  { %v890_v60 = vmax.f32 %v832_v54, 0.0  ;;  %v1612_v59 = vpop.f32.mrb[64].mxu1 }
 0x234   :  { %v1613_v62 = vpop.f32.mrb[65].mxu1 }
 0x235   :  { %v1614_v26 = vadd.f32 %v1613_v62, %v1612_v59  ;;  %v1615_v24 = vpop.f32.mrb[66].mxu1  ;;  %v910_v63 = vpack.c.bf16 %v890_v60, %v889_v58 }
 0x236   :  { %v1616_v57 = vpop.f32.mrb[67].mxu1 }
 0x237   :  { %v837_v0 = vadd.f32 %v1614_v26, %v2240_v61  ;;  %v1617_v53 = vadd.f32 %v1616_v57, %v1615_v24  ;;  %1697 = vmatmul.mubr.bf16.gmra.mrb[68].mxu0 %v910_v63 }
 0x239   :  { %v840_v1 = vadd.f32 %v1617_v53, %v2240_v61  ;;  %v891_v3 = vmax.f32 %v837_v0, 0.0 }
 0x23b   :  { %v892_v4 = vmax.f32 %v840_v1, 0.0  ;;  %v1618_v5 = vpop.f32.mrb[68].mxu1 }
 0x23c   :  { %v1619_v6 = vpop.f32.mrb[69].mxu1 }
 0x23d   :  { %v1620_v7 = vadd.f32 %v1619_v6, %v1618_v5  ;;  %v1621_v8 = vpop.f32.mrb[70].mxu1  ;;  %v911_v9 = vpack.c.bf16 %v892_v4, %v891_v3 }
 0x23e   :  { %v1622_v10 = vpop.f32.mrb[71].mxu1 }
 0x23f   :  { %v845_v11 = vadd.f32 %v1620_v7, %v2240_v61  ;;  %v1623_v12 = vadd.f32 %v1622_v10, %v1621_v8  ;;  %1700 = vmatprep.mubr.bf16.mxu0 %v911_v9 }
 0x241   :  { %v848_v13 = vadd.f32 %v1623_v12, %v2240_v61  ;;  %v893_v14 = vmax.f32 %v845_v11, 0.0 }
 0x243   :  { %v894_v15 = vmax.f32 %v848_v13, 0.0  ;;  %v1624_v16 = vpop.f32.mrb[72].mxu1 }
 0x244   :  { %v1625_v17 = vpop.f32.mrb[73].mxu1 }
 0x245   :  { %v1626_v18 = vadd.f32 %v1625_v17, %v1624_v16  ;;  %v1627_v19 = vpop.f32.mrb[74].mxu1  ;;  %v912_v20 = vpack.c.bf16 %v894_v15, %v893_v14 }
 0x246   :  { %v1628_v21 = vpop.f32.mrb[75].mxu1 }
 0x247   :  { %v853_v22 = vadd.f32 %v1626_v18, %v2240_v61  ;;  %v1629_v23 = vadd.f32 %v1628_v21, %v1627_v19  ;;  %1701 = vmatmul.mubr.bf16.gmra.mrb[72].mxu0 %v912_v20 }
 0x249   :  { %v856_v25 = vadd.f32 %v1629_v23, %v2240_v61  ;;  %v895_v27 = vmax.f32 %v853_v22, 0.0 }
 0x24b   :  { %v896_v28 = vmax.f32 %v856_v25, 0.0  ;;  %v1630_v29 = vpop.f32.mrb[76].mxu1 }
 0x24c   :  { %v1631_v31 = vpop.f32.mrb[77].mxu1 }
 0x24d   :  { %v1632_v33 = vadd.f32 %v1631_v31, %v1630_v29  ;;  %v1633_v34 = vpop.f32.mrb[78].mxu1  ;;  %v913_v35 = vpack.c.bf16 %v896_v28, %v895_v27 }
 0x24e   :  { %v1634_v36 = vpop.f32.mrb[79].mxu1 }
 0x24f   :  { %v861_v37 = vadd.f32 %v1632_v33, %v2240_v61  ;;  %v1635_v38 = vadd.f32 %v1634_v36, %v1633_v34  ;;  %1704 = vmatprep.mubr.bf16.mxu0 %v913_v35 }
 0x251   :  { %v864_v39 = vadd.f32 %v1635_v38, %v2240_v61  ;;  %v897_v40 = vmax.f32 %v861_v37, 0.0 }
 0x253   :  { %v898_v41 = vmax.f32 %v864_v39, 0.0 }
 0x255   :  { %v914_v42 = vpack.c.bf16 %v898_v41, %v897_v40 }
 0x257   :  { %1705 = vmatmul.mubr.bf16.gmra.mrb[76].mxu0 %v914_v42 }
 0x2ba   :  { %v1678_v43 = vpop.f32.mrb[48].mxu0 }
 0x2bb   :  { %v1020_v45 = vpop.f32.mrb[49].mxu0  ;;  %v1029_v47 = vadd.f32 %v1678_v43, %v2277_v44 }
 0x2bc   :  { %v1679_v46 = vpop.f32.mrb[50].mxu0  ;;  %v1021_v2 = vadd.f32 %v2277_v44, %v1020_v45 }
 0x2bd   :  { %v1032_v48 = vadd.f32 %v1679_v46, %v2277_v44  ;;  %v1023_v49 = vpop.f32.mrb[51].mxu0 }
 0x2be   :  { %v1024_v61 = vadd.f32 %v2277_v44, %v1023_v49 }
 0x2bf   :  { %v1437_v50 = vpack.c.bf16 %v1032_v48, %v1029_v47 }
 0x2c0   :  { %v1432_v55 = vpack.c.bf16 %v1024_v61, %v1021_v2 }
 0x2c1   :  { %1509 = vst [vmem:[#allocation3 + $0x8] sm:$0xff] %v1437_v50  }
 0x2c2   :  { %1433 = vst [vmem:[#allocation3] sm:$0xff] %v1432_v55  }
 0x2ca   :  { %v1682_v56 = vpop.f32.mrb[52].mxu0 }
 0x2cb   :  { %v1036_v51 = vpop.f32.mrb[53].mxu0  ;;  %v1045_v30 = vadd.f32 %v1682_v56, %v2277_v44 }
 0x2cc   :  { %v1683_v32 = vpop.f32.mrb[54].mxu0  ;;  %v1037_v58 = vadd.f32 %v2277_v44, %v1036_v51 }
 0x2cd   :  { %v1048_v52 = vadd.f32 %v1683_v32, %v2277_v44  ;;  %v1039_v54 = vpop.f32.mrb[55].mxu0 }
 0x2ce   :  { %v1040_v60 = vadd.f32 %v2277_v44, %v1039_v54 }
 0x2cf   :  { %v1447_v59 = vpack.c.bf16 %v1048_v52, %v1045_v30 }
 0x2d0   :  { %v1442_v62 = vpack.c.bf16 %v1040_v60, %v1037_v58 }
 0x2d1   :  { %1511 = vst [vmem:[#allocation3 + $0x18] sm:$0xff] %v1447_v59  }
 0x2d2   :  { %1510 = vst [vmem:[#allocation3 + $0x10] sm:$0xff] %v1442_v62  }
 0x2da   :  { %v1686_v26 = vpop.f32.mrb[56].mxu0 }
 0x2db   :  { %v1052_v24 = vpop.f32.mrb[57].mxu0  ;;  %v1061_v57 = vadd.f32 %v1686_v26, %v2277_v44 }
 0x2dc   :  { %v1687_v63 = vpop.f32.mrb[58].mxu0  ;;  %v1053_v1 = vadd.f32 %v2277_v44, %v1052_v24 }
 0x2dd   :  { %v1064_v0 = vadd.f32 %v1687_v63, %v2277_v44  ;;  %v1055_v53 = vpop.f32.mrb[59].mxu0 }
 0x2de   :  { %v1056_v3 = vadd.f32 %v2277_v44, %v1055_v53 }
 0x2df   :  { %v1457_v4 = vpack.c.bf16 %v1064_v0, %v1061_v57 }
 0x2e0   :  { %v1452_v5 = vpack.c.bf16 %v1056_v3, %v1053_v1 }
 0x2e1   :  { %1513 = vst [vmem:[#allocation3 + $0x28] sm:$0xff] %v1457_v4  }
 0x2e2   :  { %1512 = vst [vmem:[#allocation3 + $0x20] sm:$0xff] %v1452_v5  }
 0x2ea   :  { %v1690_v6 = vpop.f32.mrb[60].mxu0 }
 0x2eb   :  { %v1068_v7 = vpop.f32.mrb[61].mxu0  ;;  %v1077_v9 = vadd.f32 %v1690_v6, %v2277_v44 }
 0x2ec   :  { %v1691_v8 = vpop.f32.mrb[62].mxu0  ;;  %v1069_v12 = vadd.f32 %v2277_v44, %v1068_v7 }
 0x2ed   :  { %v1080_v10 = vadd.f32 %v1691_v8, %v2277_v44  ;;  %v1071_v11 = vpop.f32.mrb[63].mxu0 }
 0x2ee   :  { %v1072_v13 = vadd.f32 %v2277_v44, %v1071_v11 }
 0x2ef   :  { %v1467_v14 = vpack.c.bf16 %v1080_v10, %v1077_v9 }
 0x2f0   :  { %v1462_v15 = vpack.c.bf16 %v1072_v13, %v1069_v12 }
 0x2f1   :  { %1515 = vst [vmem:[#allocation3 + $0x38] sm:$0xff] %v1467_v14  }
 0x2f2   :  { %1514 = vst [vmem:[#allocation3 + $0x30] sm:$0xff] %v1462_v15  }
 0x2fa   :  { %v1694_v16 = vpop.f32.mrb[64].mxu0 }
 0x2fb   :  { %v1084_v17 = vpop.f32.mrb[65].mxu0  ;;  %v1093_v19 = vadd.f32 %v1694_v16, %v2277_v44 }
 0x2fc   :  { %v1695_v18 = vpop.f32.mrb[66].mxu0  ;;  %v1085_v22 = vadd.f32 %v2277_v44, %v1084_v17 }
 0x2fd   :  { %v1096_v20 = vadd.f32 %v1695_v18, %v2277_v44  ;;  %v1087_v21 = vpop.f32.mrb[67].mxu0 }
 0x2fe   :  { %v1088_v23 = vadd.f32 %v2277_v44, %v1087_v21 }
 0x2ff   :  { %v1477_v25 = vpack.c.bf16 %v1096_v20, %v1093_v19 }
 0x300   :  { %v1472_v27 = vpack.c.bf16 %v1088_v23, %v1085_v22 }
 0x301   :  { %1517 = vst [vmem:[#allocation3 + $0x48] sm:$0xff] %v1477_v25  }
 0x302   :  { %1516 = vst [vmem:[#allocation3 + $0x40] sm:$0xff] %v1472_v27  }
 0x30a   :  { %v1698_v28 = vpop.f32.mrb[68].mxu0 }
 0x30b   :  { %v1100_v29 = vpop.f32.mrb[69].mxu0  ;;  %v1109_v33 = vadd.f32 %v1698_v28, %v2277_v44 }
 0x30c   :  { %v1699_v31 = vpop.f32.mrb[70].mxu0  ;;  %v1101_v36 = vadd.f32 %v2277_v44, %v1100_v29 }
 0x30d   :  { %v1112_v34 = vadd.f32 %v1699_v31, %v2277_v44  ;;  %v1103_v35 = vpop.f32.mrb[71].mxu0 }
 0x30e   :  { %v1104_v37 = vadd.f32 %v2277_v44, %v1103_v35 }
 0x30f   :  { %v1487_v38 = vpack.c.bf16 %v1112_v34, %v1109_v33 }
 0x310   :  { %v1482_v39 = vpack.c.bf16 %v1104_v37, %v1101_v36 }
 0x311   :  { %1519 = vst [vmem:[#allocation3 + $0x58] sm:$0xff] %v1487_v38  }
 0x312   :  { %1518 = vst [vmem:[#allocation3 + $0x50] sm:$0xff] %v1482_v39  }
 0x31a   :  { %v1702_v40 = vpop.f32.mrb[72].mxu0 }
 0x31b   :  { %v1116_v41 = vpop.f32.mrb[73].mxu0  ;;  %v1125_v43 = vadd.f32 %v1702_v40, %v2277_v44 }
 0x31c   :  { %v1703_v42 = vpop.f32.mrb[74].mxu0  ;;  %v1117_v47 = vadd.f32 %v2277_v44, %v1116_v41 }
 0x31d   :  { %v1128_v45 = vadd.f32 %v1703_v42, %v2277_v44  ;;  %v1119_v46 = vpop.f32.mrb[75].mxu0 }
 0x31e   :  { %v1120_v48 = vadd.f32 %v2277_v44, %v1119_v46 }
 0x31f   :  { %v1497_v49 = vpack.c.bf16 %v1128_v45, %v1125_v43 }
 0x320   :  { %v1492_v2 = vpack.c.bf16 %v1120_v48, %v1117_v47 }
 0x321   :  { %1521 = vst [vmem:[#allocation3 + $0x68] sm:$0xff] %v1497_v49  }
 0x322   :  { %1520 = vst [vmem:[#allocation3 + $0x60] sm:$0xff] %v1492_v2  }
 0x32a   :  { %v1706_v61 = vpop.f32.mrb[76].mxu0 }
 0x32b   :  { %v1132_v50 = vpop.f32.mrb[77].mxu0  ;;  %v1141_v56 = vadd.f32 %v1706_v61, %v2277_v44 }
 0x32c   :  { %v1707_v55 = vpop.f32.mrb[78].mxu0  ;;  %v1133_v30 = vadd.f32 %v2277_v44, %v1132_v50 }
 0x32d   :  { %v1144_v51 = vadd.f32 %v1707_v55, %v2277_v44  ;;  %v1135_v32 = vpop.f32.mrb[79].mxu0 }
 0x32e   :  { %v1136_v52 = vadd.f32 %v2277_v44, %v1135_v32 }
 0x32f   :  { %v1507_v54 = vpack.c.bf16 %v1144_v51, %v1141_v56 }
 0x330   :  { %v1502_v58 = vpack.c.bf16 %v1136_v52, %v1133_v30 }
 0x331   :  { %1523 = vst [vmem:[#allocation3 + $0x78] sm:$0xff] %v1507_v54  }
 0x332   :  { %1522 = vst [vmem:[#allocation3 + $0x70] sm:$0xff] %v1502_v58  }
 0x333   :  { %1788 = shalt.err (!%p1785_p4)
}
 0x334   :  { %s1789_s30 = scalar_lea.hbm %s2330_s7, 2048 }
 0x335   :  { %p1790_p5 = scmp.ne.s32.totalorder %s2330_s7, %s1789_s30  ;;  %p1793_p6 = scmp.lt.u32.totalorder %s1789_s30, %s2330_s7 }
 0x337   :  { %p1795_p7 = pnand %p1793_p6, %p1790_p5 }
 0x339   :  { %1798 = shalt.err (!%p1795_p7)
}
 0x33a   :  { %s1804_s3 = smov 64   ;;  %s1805_s12 = smov 4  }
 0x33b   :  { %1318 = dma.vmem_to_hbm [thread:$0]  %s1313_s27, 2048, %s2330_s7, [#allocation4], %s1804_s3, %s1804_s3, %s1805_s12  }
 0x33c   :  { %1799 = dma.done.wait [#allocation4], 2048  }
 0x33d   :  { %1800 = vsyncadd [#allocation4], 4294965248 }
 0x33e   :  { %1322 = vsyncpa [#allocation4], 1 }

</bundles_post_ra>
